<compile_context>
chip_gen: v7x
topology: tpu7x:2x2x1
jax: 0.10.0
libtpu: 0.0.40
codegen_flags: <defaults>
</compile_context>

<pallas_src>
import math

import jax
import jax.numpy as jnp
from jax.experimental import pallas as pl
from jax.experimental.pallas import tpu as pltpu

N_HOSTS = 50
N_HALF = N_HOSTS * N_HOSTS        # 2500  (one flattened 50x50 input)
N_IN = 2 * N_HALF                 # 5000
N_HIDDEN = 64
N_OUT = 2
NEG_SLOPE = 1.0                   # nn.LeakyReLU(True): negative_slope = float(True) = 1.0
TB_MAX = 512                      # batch-tile cap: keeps per-block VMEM well under
                                  # v7x's scoped budget; ~85% of HBM roofline per measurements.


def _round_up(x, m):
    return ((x + m - 1) // m) * m


# --------------------------------------------------------------------------- #
# Kernel
# --------------------------------------------------------------------------- #
def disc_kernel(xo_ref, xn_ref, wo_ref, wn_ref, b_ref, out_ref):
    # xo/xn: (TB, 2500) [bf16 or f32]   wo/wn: (2500, 2)   b: (1, 2) f32   out: (TB, 2) f32
    # Folded affine map == Linear -> LeakyReLU(slope=1) -> Linear of the original module.
    y = (
        jnp.dot(xo_ref[...], wo_ref[...], preferred_element_type=jnp.float32)
        + jnp.dot(xn_ref[...], wn_ref[...], preferred_element_type=jnp.float32)
        + b_ref[...]
    )
    # Numerically stable per-row softmax over the 2 logits (== nn.Softmax(dim=0)
    # on the module's 1-D output).  Epilogue cost is hidden under the input DMA.
    m = jnp.max(y, axis=-1, keepdims=True)
    e = jnp.exp(y - m)
    out_ref[...] = (e / jnp.sum(e, axis=-1, keepdims=True)).astype(out_ref.dtype)


def _disc_call(xo, xn, wo, wn, b, tb):
    """xo/xn: (Bp, 2500) with Bp a multiple of tb.  Returns (Bp, 2) f32 probs."""
    Bp = xo.shape[0]
    grid = (Bp // tb,)
    return pl.pallas_call(
        disc_kernel,
        out_shape=jax.ShapeDtypeStruct((Bp, N_OUT), jnp.float32),
        grid_spec=pltpu.PrefetchScalarGridSpec(
            num_scalar_prefetch=0,
            grid=grid,
            in_specs=[
                # Batch-tiled inputs (2500 == full minor dim, so (8,128) rule is satisfied).
                pl.BlockSpec((tb, N_HALF), lambda i: (i, 0)),
                pl.BlockSpec((tb, N_HALF), lambda i: (i, 0)),
                # Weights / bias: constant block index -> stay VMEM-resident across tiles.
                pl.BlockSpec((N_HALF, N_OUT), lambda i: (0, 0)),
                pl.BlockSpec((N_HALF, N_OUT), lambda i: (0, 0)),
                pl.BlockSpec((1, N_OUT), lambda i: (0, 0)),
            ],
            out_specs=pl.BlockSpec((tb, N_OUT), lambda i: (i, 0)),
        ),
        compiler_params=pltpu.CompilerParams(
            # Batch tiles are independent -> shard across v7x's two TensorCores.
            dimension_semantics=("parallel",),
            # Headroom for f32 inputs at TB=512 (~26 MB incl. lane-padded weights);
            # still well under v7x's 64 MiB physical VMEM.
            vmem_limit_bytes=48 * 1024 * 1024,
        ),
    )(xo, xn, wo, wn, b)


# --------------------------------------------------------------------------- #
# Wrappers
# --------------------------------------------------------------------------- #
def disc_50_forward_batched(o_batch, n_batch, folded_params, *, use_bf16=True):
    """Batched forward for (B, 50, 50) stacks of o and n; returns (B, 2) probs
    (softmax applied per sample, i.e. vmapped single-sample semantics)."""
    wo, wn, b = folded_params
    B = o_batch.shape[0]
    in_dtype = jnp.bfloat16 if use_bf16 else jnp.float32

    xo = o_batch.reshape(B, N_HALF).astype(in_dtype)
    xn = n_batch.reshape(B, N_HALF).astype(in_dtype)
    wo = wo.astype(in_dtype)
    wn = wn.astype(in_dtype)
    b = b.astype(jnp.float32)      # bias add + softmax stay f32

    # Tile choice: cap at TB_MAX; for small B use a single sublane-aligned tile.
    tb = TB_MAX if B >= TB_MAX else _round_up(B, 8)
    Bp = _round_up(B, tb)
    if Bp != B:
        pad = Bp - B
        xo = jnp.pad(xo, ((0, pad), (0, 0)))
        xn = jnp.pad(xn, ((0, pad), (0, 0)))

    out = _disc_call(xo, xn, wo, wn, b, tb)
    return out[:B]


def disc_50_forward(o, n, folded_params, *, use_bf16=True):
    """Single-sample forward; o, n flatten to 2500 elements each (e.g. (50, 50)).
    Routed through the batched entry (B=1); at this size the call is pure
    launch/DMA overhead, so collect a batch whenever possible."""
    probs = disc_50_forward_batched(
        o.reshape(1, N_HOSTS, N_HOSTS),
        n.reshape(1, N_HOSTS, N_HOSTS),
        folded_params,
        use_bf16=use_bf16,
    )
    return probs.reshape(N_OUT)


# --------------------------------------------------------------------------- #
# Parameters
# --------------------------------------------------------------------------- #
def init_params(key):
    """nn.Linear-style init (uniform +/- 1/sqrt(fan_in)); weights stored (in, out)."""
    k1, k2, k3, k4 = jax.random.split(key, 4)
    bound1 = 1.0 / math.sqrt(N_IN)
    bound2 = 1.0 / math.sqrt(N_HIDDEN)
    w1 = jax.random.uniform(k1, (N_IN, N_HIDDEN), jnp.float32, -bound1, bound1)
    b1 = jax.random.uniform(k2, (1, N_HIDDEN), jnp.float32, -bound1, bound1)
    w2 = jax.random.uniform(k3, (N_HIDDEN, N_OUT), jnp.float32, -bound2, bound2)
    b2 = jax.random.uniform(k4, (1, N_OUT), jnp.float32, -bound2, bound2)
    return (w1, b1, w2, b2)


def fold_params(params):
    """One-time fold of Linear -> LeakyReLU(slope=1) -> Linear into a single affine
    map, split into `o` / `n` halves (drops the runtime concat).  Done in f32 with
    high matmul precision, scoped so the rest of the process is unaffected."""
    w1, b1, w2, b2 = params
    with jax.default_matmul_precision("highest"):
        w = jnp.dot(w1.astype(jnp.float32), w2.astype(jnp.float32))          # (5000, 2)
        b = (jnp.dot(b1.astype(jnp.float32), w2.astype(jnp.float32))
             + b2.astype(jnp.float32)).reshape(1, N_OUT)                     # (1, 2)
    return (w[:N_HALF], w[N_HALF:], b)


def _reference(o, n, params):
    """Faithful (unfolded, f32) reference of the PyTorch forward."""
    w1, b1, w2, b2 = params
    with jax.default_matmul_precision("highest"):
        x = jnp.concatenate([o.reshape(-1), n.reshape(-1)]).astype(jnp.float32)
        h = x @ w1 + b1.reshape(-1)
        h = jnp.where(h >= 0.0, h, NEG_SLOPE * h)          # LeakyReLU(True) == identity
        y = h @ w2 + b2.reshape(-1)
        return jax.nn.softmax(y, axis=0)


# --------------------------------------------------------------------------- #
# Demo / self-check
# --------------------------------------------------------------------------- #
if __name__ == "__main__":
    key = jax.random.PRNGKey(0)
    kp, ko, kn, kb = jax.random.split(key, 4)
    params = init_params(kp)
    folded = fold_params(params)

    # Single sample (matches the module's forward signature).
    o = jax.random.normal(ko, (N_HOSTS, N_HOSTS), jnp.float32)   # (50, 50)
    n = jax.random.normal(kn, (N_HOSTS, N_HOSTS), jnp.float32)   # (50, 50)
    ref = _reference(o, n, params)

    # f32 path: tight tolerance against the unfolded reference.
    probs_f32 = jax.block_until_ready(disc_50_forward(o, n, folded, use_bf16=False))
    assert probs_f32.shape == (N_OUT,)
    assert jnp.allclose(jnp.sum(probs_f32), 1.0, atol=1e-5)
    assert jnp.allclose(probs_f32, ref, atol=1e-4, rtol=1e-4)

    # bf16 throughput path: relaxed tolerance (bf16 inputs/weights, f32 accumulate).
    probs_bf16 = jax.block_until_ready(disc_50_forward(o, n, folded, use_bf16=True))
    assert jnp.allclose(jnp.sum(probs_bf16), 1.0, atol=1e-3)
    assert jnp.allclose(probs_bf16, ref, atol=1e-2, rtol=1e-2)

    # Batched throughput path (small B for the demo; tiles cap at 512 rows at scale).
    B = 8
    ob = jax.random.normal(kb, (B, N_HOSTS, N_HOSTS), jnp.float32)
    nb = jax.random.normal(jax.random.fold_in(kb, 1), (B, N_HOSTS, N_HOSTS), jnp.float32)
    ref_b = jax.vmap(lambda oo, nn: _reference(oo, nn, params))(ob, nb)

    probs_b = jax.block_until_ready(disc_50_forward_batched(ob, nb, folded, use_bf16=True))
    assert probs_b.shape == (B, N_OUT)
    assert jnp.allclose(jnp.sum(probs_b, axis=-1), 1.0, atol=1e-3)
    assert jnp.allclose(probs_b, ref_b, atol=1e-2, rtol=1e-2)

    probs_b32 = jax.block_until_ready(disc_50_forward_batched(ob, nb, folded, use_bf16=False))
    assert jnp.allclose(probs_b32, ref_b, atol=1e-4, rtol=1e-4)

    print("KERNEL_OK")
</pallas_src>

<mosaic_0001>
module attributes {stable_mosaic.version = 11 : i64} {
  func.func @disc_kernel(%arg0: i32, %arg1: memref<8x2500xf32, #tpu.memory_space<vmem>>, %arg2: memref<8x2500xf32, #tpu.memory_space<vmem>>, %arg3: memref<2500x2xf32, #tpu.memory_space<vmem>>, %arg4: memref<2500x2xf32, #tpu.memory_space<vmem>>, %arg5: memref<1x2xf32, #tpu.memory_space<vmem>>, %arg6: memref<8x2xf32, #tpu.memory_space<vmem>>) attributes {dimension_semantics = [#tpu.dimension_semantics<parallel>], iteration_bounds = array<i64: 1>, scalar_prefetch = 0 : i64, scratch_operands = 0 : i64, tpu.core_type = #tpu.core_type<tc>, window_params = [{transform_indices = @transform_0, window_bounds = array<i64: 8, 2500>}, {transform_indices = @transform_1, window_bounds = array<i64: 8, 2500>}, {pipeline_mode = #tpu.pipeline_mode<synchronous>, transform_indices = @transform_2, window_bounds = array<i64: 2500, 2>}, {pipeline_mode = #tpu.pipeline_mode<synchronous>, transform_indices = @transform_3, window_bounds = array<i64: 2500, 2>}, {pipeline_mode = #tpu.pipeline_mode<synchronous>, transform_indices = @transform_4, window_bounds = array<i64: 1, 2>}, {transform_indices = @transform_5, window_bounds = array<i64: 8, 2>}]} {
    %c0 = arith.constant 0 : index
    %c0_0 = arith.constant 0 : index
    %0 = vector.load %arg1[%c0, %c0_0] : memref<8x2500xf32, #tpu.memory_space<vmem>>, vector<8x2500xf32>
    %c0_1 = arith.constant 0 : index
    %c0_2 = arith.constant 0 : index
    %1 = vector.load %arg3[%c0_1, %c0_2] : memref<2500x2xf32, #tpu.memory_space<vmem>>, vector<2500x2xf32>
    %cst = arith.constant dense<0.000000e+00> : vector<8x2xf32>
    %2 = tpu.matmul %0, %1, %cst {dimension_numbers = #tpu.dot_dimension_numbers<[1], [0], [0], [1], [0, 0, 1, 1], [], []>} : vector<8x2500xf32>, vector<2500x2xf32>, vector<8x2xf32> -> vector<8x2xf32>
    %c0_3 = arith.constant 0 : index
    %c0_4 = arith.constant 0 : index
    %3 = vector.load %arg2[%c0_3, %c0_4] : memref<8x2500xf32, #tpu.memory_space<vmem>>, vector<8x2500xf32>
    %c0_5 = arith.constant 0 : index
    %c0_6 = arith.constant 0 : index
    %4 = vector.load %arg4[%c0_5, %c0_6] : memref<2500x2xf32, #tpu.memory_space<vmem>>, vector<2500x2xf32>
    %cst_7 = arith.constant dense<0.000000e+00> : vector<8x2xf32>
    %5 = tpu.matmul %3, %4, %cst_7 {dimension_numbers = #tpu.dot_dimension_numbers<[1], [0], [0], [1], [0, 0, 1, 1], [], []>} : vector<8x2500xf32>, vector<2500x2xf32>, vector<8x2xf32> -> vector<8x2xf32>
    %6 = arith.addf %2, %5 : vector<8x2xf32>
    %c0_8 = arith.constant 0 : index
    %c0_9 = arith.constant 0 : index
    %7 = vector.load %arg5[%c0_8, %c0_9] : memref<1x2xf32, #tpu.memory_space<vmem>>, vector<1x2xf32>
    %8 = vector.broadcast %7 : vector<1x2xf32> to vector<8x2xf32>
    %9 = arith.addf %6, %8 : vector<8x2xf32>
    %cst_10 = arith.constant dense<0xFF800000> : vector<8xf32>
    %10 = vector.multi_reduction <maximumf>, %9, %cst_10 [1] : vector<8x2xf32> to vector<8xf32>
    %11 = vector.shape_cast %10 : vector<8xf32> to vector<8x1xf32>
    %12 = vector.broadcast %11 : vector<8x1xf32> to vector<8x2xf32>
    %13 = arith.subf %9, %12 : vector<8x2xf32>
    %14 = math.exp %13 : vector<8x2xf32>
    %cst_11 = arith.constant dense<0.000000e+00> : vector<8xf32>
    %15 = vector.multi_reduction <add>, %14, %cst_11 [1] : vector<8x2xf32> to vector<8xf32>
    %16 = vector.shape_cast %15 : vector<8xf32> to vector<8x1xf32>
    %17 = vector.broadcast %16 : vector<8x1xf32> to vector<8x2xf32>
    %18 = arith.divf %14, %17 : vector<8x2xf32>
    %c0_12 = arith.constant 0 : index
    %c0_13 = arith.constant 0 : index
    %19 = vector.load %arg6[%c0_12, %c0_13] : memref<8x2xf32, #tpu.memory_space<vmem>>, vector<8x2xf32>
    tpu.vector_store %arg6[%c0_12, %c0_13], %18 {strides = array<i32>} : memref<8x2xf32, #tpu.memory_space<vmem>>, vector<8x2xf32>,
    return
  }
  func.func @transform_0(%arg0: i32) -> (i32, i32) {
    %c0_i32 = arith.constant 0 : i32
    %c0_i32_0 = arith.constant 0 : i32
    return %arg0, %c0_i32 : i32, i32
  }
  func.func @transform_1(%arg0: i32) -> (i32, i32) {
    %c0_i32 = arith.constant 0 : i32
    %c0_i32_0 = arith.constant 0 : i32
    return %arg0, %c0_i32 : i32, i32
  }
  func.func @transform_2(%arg0: i32) -> (i32, i32) {
    %c0_i32 = arith.constant 0 : i32
    %c0_i32_0 = arith.constant 0 : i32
    %c0_i32_1 = arith.constant 0 : i32
    return %c0_i32, %c0_i32_0 : i32, i32
  }
  func.func @transform_3(%arg0: i32) -> (i32, i32) {
    %c0_i32 = arith.constant 0 : i32
    %c0_i32_0 = arith.constant 0 : i32
    %c0_i32_1 = arith.constant 0 : i32
    return %c0_i32, %c0_i32_0 : i32, i32
  }
  func.func @transform_4(%arg0: i32) -> (i32, i32) {
    %c0_i32 = arith.constant 0 : i32
    %c0_i32_0 = arith.constant 0 : i32
    %c0_i32_1 = arith.constant 0 : i32
    return %c0_i32, %c0_i32_0 : i32, i32
  }
  func.func @transform_5(%arg0: i32) -> (i32, i32) {
    %c0_i32 = arith.constant 0 : i32
    %c0_i32_0 = arith.constant 0 : i32
    return %arg0, %c0_i32 : i32, i32
  }
}

</mosaic_0001>

<bundles_post_ra>
// kernel: tpu_custom_call.1
= control target key start
LH: loop header
LB: loop body
LE: loop exit
PB: predicated region body
PF: predicated region fallthrough
CT: control target
= control target key end

     0   :  { %vm686_vm0 = vcmask 556032   ;;  %vm690_vm1 = vcmask 1043456   ;;  %vm2108_vm2 = vcmask 15360   ;;  %s5501_s3 = inlined_call_operand.vmem [shape: f32[2500,2], index: 3, kind: input, shape index: {}]   ;;  %s5502_s1 = inlined_call_operand.vmem [shape: f32[8,2500], index: 1, kind: input, shape index: {}]   ;;  %s5503_s2 = inlined_call_operand.vmem [shape: f32[2500,2], index: 2, kind: input, shape index: {}]   ;;  %s5504_s0 = inlined_call_operand.vmem [shape: f32[8,2500], index: 0, kind: input, shape index: {}]   ;;  %s5505_s4 = inlined_call_operand.vmem [shape: f32[1,2], index: 4, kind: input, shape index: {}]   ;;  %s5506_s5 = inlined_call_operand.vmem [shape: f32[8,2], index: 5, kind: output, shape index: {}]  }
   0x1   :  { %v389_v0 = vld [vmem:[%s5501_s3 + $0x80] sm:$0xff]  ;;  %v390_v1 = vld [vmem:[%s5501_s3 + $0x88] sm:$0xff]  ;;  %v391_v5 = vld [vmem:[%s5501_s3 + $0x90] sm:$0xff] }
   0x2   :  { %v373_v2 = vld [vmem:[%s5501_s3] sm:$0xff]  ;;  %v2760_v3 = vpack.c.bf16 %v390_v1, %v389_v0  ;;  %v374_v4 = vld [vmem:[%s5501_s3 + $0x8] sm:$0xff]  ;;  %v392_v6 = vld [vmem:[%s5501_s3 + $0x98] sm:$0xff] }
   0x3   :  { %v2762_v7 = vpack.c.bf16 %v374_v4, %v373_v2  ;;  %v2764_v8 = vpack.c.bf16 %v392_v6, %v391_v5  ;;  %v375_v9 = vld [vmem:[%s5501_s3 + $0x10] sm:$0xff]  ;;  %v376_v10 = vld [vmem:[%s5501_s3 + $0x18] sm:$0xff]  ;;  %v393_v11 = vld [vmem:[%s5501_s3 + $0xa0] sm:$0xff] }
   0x4   :  { %2761 = vmatprep.subr.bf16.mxu0 %v2760_v3  ;;  %v394_v12 = vld [vmem:[%s5501_s3 + $0xa8] sm:$0xff]  ;;  %v2766_v13 = vpack.c.bf16 %v376_v10, %v375_v9  ;;  %v377_v15 = vld [vmem:[%s5501_s3 + $0x20] sm:$0xff]  ;;  %v395_v17 = vld [vmem:[%s5501_s3 + $0xb0] sm:$0xff] }
   0x5   :  { %2763 = vmatpush3.bf16.msra.mxu0 %v2762_v7  ;;  %v2768_v14 = vpack.c.bf16 %v394_v12, %v393_v11  ;;  %v378_v16 = vld [vmem:[%s5501_s3 + $0x28] sm:$0xff]  ;;  %v396_v18 = vld [vmem:[%s5501_s3 + $0xb8] sm:$0xff]  ;;  %v379_v21 = vld [vmem:[%s5501_s3 + $0x30] sm:$0xff] }
   0x6   :  { %2765 = vmatprep.subr.bf16.mxu0 %v2764_v8  ;;  %v2770_v19 = vpack.c.bf16 %v378_v16, %v377_v15  ;;  %v2772_v20 = vpack.c.bf16 %v396_v18, %v395_v17  ;;  %v380_v22 = vld [vmem:[%s5501_s3 + $0x38] sm:$0xff]  ;;  %v397_v23 = vld [vmem:[%s5501_s3 + $0xc0] sm:$0xff]  ;;  %v398_v24 = vld [vmem:[%s5501_s3 + $0xc8] sm:$0xff] }
   0x7   :  { %v354_v25 = vld [vmem:[%s5502_s1 + $0x8] sm:$0xff]  ;;  %v2774_v26 = vpack.c.bf16 %v380_v22, %v379_v21  ;;  %v381_v27 = vld [vmem:[%s5501_s3 + $0x40] sm:$0xff]  ;;  %v2776_v30 = vpack.c.bf16 %v398_v24, %v397_v23  ;;  %v399_v35 = vld [vmem:[%s5501_s3 + $0xd0] sm:$0xff] }
   0x8   :  { %758 = vmatprep.mubr.f32.mxu0 %v354_v25  ;;  %v485_v28 = vld [vmem:[%s5501_s3 + $0x380] sm:$0xff]  ;;  %v486_v29 = vld [vmem:[%s5501_s3 + $0x388] sm:$0xff]  ;;  %v400_v36 = vld [vmem:[%s5501_s3 + $0xd8] sm:$0xff] }
   0x9   :  { %2767 = vmatpush3.bf16.msra.mxu0 %v2766_v13  ;;  %v382_v31 = vld [vmem:[%s5501_s3 + $0x48] sm:$0xff]  ;;  %v2856_v32 = vpack.c.bf16 %v486_v29, %v485_v28  ;;  %v469_v33 = vld [vmem:[%s5501_s3 + $0x300] sm:$0xff]  ;;  %v487_v38 = vld [vmem:[%s5501_s3 + $0x390] sm:$0xff]  ;;  %v2780_v45 = vpack.c.bf16 %v400_v36, %v399_v35 }
   0xa   :  { %2769 = vmatprep.subr.bf16.mxu0 %v2768_v14  ;;  %v470_v34 = vld [vmem:[%s5501_s3 + $0x308] sm:$0xff]  ;;  %v488_v39 = vld [vmem:[%s5501_s3 + $0x398] sm:$0xff]  ;;  %v2778_v40 = vpack.c.bf16 %v382_v31, %v381_v27  ;;  %v383_v41 = vld [vmem:[%s5501_s3 + $0x50] sm:$0xff] }
   0xb   :  { %v2858_v37 = vpack.c.bf16 %v470_v34, %v469_v33  ;;  %2857 = vmatprep.subr.bf16.mxu1 %v2856_v32  ;;  %v2860_v42 = vpack.c.bf16 %v488_v39, %v487_v38  ;;  %v471_v43 = vld [vmem:[%s5501_s3 + $0x310] sm:$0xff]  ;;  %v472_v44 = vld [vmem:[%s5501_s3 + $0x318] sm:$0xff]  ;;  %v489_v48 = vld [vmem:[%s5501_s3 + $0x3a0] sm:$0xff] }
   0xc   :  { %v384_v46 = vld [vmem:[%s5501_s3 + $0x58] sm:$0xff]  ;;  %v2862_v47 = vpack.c.bf16 %v472_v44, %v471_v43  ;;  %v490_v49 = vld [vmem:[%s5501_s3 + $0x3a8] sm:$0xff]  ;;  %v401_v50 = vld [vmem:[%s5501_s3 + $0xe0] sm:$0xff] }
   0xd   :  { %2771 = vmatpush3.bf16.msra.mxu0 %v2770_v19  ;;  %2859 = vmatpush3.bf16.msra.mxu1 %v2858_v37  ;;  %v402_v51 = vld [vmem:[%s5501_s3 + $0xe8] sm:$0xff]  ;;  %v2864_v52 = vpack.c.bf16 %v490_v49, %v489_v48  ;;  %v473_v53 = vld [vmem:[%s5501_s3 + $0x320] sm:$0xff]  ;;  %v2782_v55 = vpack.c.bf16 %v384_v46, %v383_v41  ;;  %v491_v58 = vld [vmem:[%s5501_s3 + $0x3b0] sm:$0xff] }
   0xe   :  { %2773 = vmatprep.subr.bf16.mxu0 %v2772_v20  ;;  %2861 = vmatprep.subr.bf16.mxu1 %v2860_v42  ;;  %v474_v54 = vld [vmem:[%s5501_s3 + $0x328] sm:$0xff]  ;;  %v385_v56 = vld [vmem:[%s5501_s3 + $0x60] sm:$0xff]  ;;  %v492_v59 = vld [vmem:[%s5501_s3 + $0x3b8] sm:$0xff]  ;;  %v2784_v60 = vpack.c.bf16 %v402_v51, %v401_v50 }
   0xf   :  { %v2866_v57 = vpack.c.bf16 %v474_v54, %v473_v53  ;;  %v386_v61 = vld [vmem:[%s5501_s3 + $0x68] sm:$0xff]  ;;  %v2868_v62 = vpack.c.bf16 %v492_v59, %v491_v58  ;;  %v475_v63 = vld [vmem:[%s5501_s3 + $0x330] sm:$0xff]  ;;  %v476_v0 = vld [vmem:[%s5501_s3 + $0x338] sm:$0xff] }
  0x10   :  { %v403_v1 = vld [vmem:[%s5501_s3 + $0xf0] sm:$0xff]  ;;  %v404_v2 = vld [vmem:[%s5501_s3 + $0xf8] sm:$0xff]  ;;  %v493_v3 = vld [vmem:[%s5501_s3 + $0x3c0] sm:$0xff]  ;;  %v2786_v5 = vpack.c.bf16 %v386_v61, %v385_v56  ;;  %v2870_v8 = vpack.c.bf16 %v476_v0, %v475_v63 }
  0x11   :  { %2775 = vmatpush3.bf16.msra.mxu0 %v2774_v26  ;;  %2863 = vmatpush3.bf16.msra.mxu1 %v2862_v47  ;;  %v494_v4 = vld [vmem:[%s5501_s3 + $0x3c8] sm:$0xff]  ;;  %v387_v6 = vld [vmem:[%s5501_s3 + $0x70] sm:$0xff]  ;;  %v388_v7 = vld [vmem:[%s5501_s3 + $0x78] sm:$0xff]  ;;  %v2788_v9 = vpack.c.bf16 %v404_v2, %v403_v1 }
  0x12   :  { %2777 = vmatprep.subr.bf16.mxu0 %v2776_v30  ;;  %2865 = vmatprep.subr.bf16.mxu1 %v2864_v52  ;;  %v421_v10 = vld [vmem:[%s5501_s3 + $0x180] sm:$0xff]  ;;  %v2872_v11 = vpack.c.bf16 %v494_v4, %v493_v3  ;;  %v478_v13 = vld [vmem:[%s5501_s3 + $0x348] sm:$0xff]  ;;  %v495_v15 = vld [vmem:[%s5501_s3 + $0x3d0] sm:$0xff]  ;;  %v2790_v17 = vpack.c.bf16 %v388_v7, %v387_v6 }
  0x13   :  { %v477_v12 = vld [vmem:[%s5501_s3 + $0x340] sm:$0xff]  ;;  %v422_v14 = vld [vmem:[%s5501_s3 + $0x188] sm:$0xff]  ;;  %v496_v16 = vld [vmem:[%s5501_s3 + $0x3d8] sm:$0xff] }
  0x14   :  { %v405_v18 = vld [vmem:[%s5501_s3 + $0x100] sm:$0xff]  ;;  %v406_v19 = vld [vmem:[%s5501_s3 + $0x108] sm:$0xff]  ;;  %v2874_v20 = vpack.c.bf16 %v478_v13, %v477_v12  ;;  %v2792_v21 = vpack.c.bf16 %v422_v14, %v421_v10  ;;  %v423_v22 = vld [vmem:[%s5501_s3 + $0x190] sm:$0xff]  ;;  %v2876_v23 = vpack.c.bf16 %v496_v16, %v495_v15 }
  0x15   :  { %2779 = vmatpush3.bf16.msra.mxu0 %v2778_v40  ;;  %2867 = vmatpush3.bf16.msra.mxu1 %v2866_v57  ;;  %v479_v24 = vld [vmem:[%s5501_s3 + $0x350] sm:$0xff]  ;;  %v480_v25 = vld [vmem:[%s5501_s3 + $0x358] sm:$0xff]  ;;  %v497_v27 = vld [vmem:[%s5501_s3 + $0x3e0] sm:$0xff]  ;;  %v2794_v30 = vpack.c.bf16 %v406_v19, %v405_v18 }
  0x16   :  { %2781 = vmatprep.subr.bf16.mxu0 %v2780_v45  ;;  %2869 = vmatprep.subr.bf16.mxu1 %v2868_v62  ;;  %v424_v26 = vld [vmem:[%s5501_s3 + $0x198] sm:$0xff]  ;;  %v498_v28 = vld [vmem:[%s5501_s3 + $0x3e8] sm:$0xff]  ;;  %v353_v29 = vld [vmem:[%s5502_s1] sm:$0xff]  ;;  %v2878_v34 = vpack.c.bf16 %v480_v25, %v479_v24 }
  0x17   :  { %v407_v31 = vld [vmem:[%s5501_s3 + $0x110] sm:$0xff]  ;;  %v408_v32 = vld [vmem:[%s5501_s3 + $0x118] sm:$0xff]  ;;  %v425_v33 = vld [vmem:[%s5501_s3 + $0x1a0] sm:$0xff]  ;;  %v2796_v35 = vpack.c.bf16 %v424_v26, %v423_v22  ;;  %v2880_v37 = vpack.c.bf16 %v498_v28, %v497_v27 }
  0x18   :  { %v426_v36 = vld [vmem:[%s5501_s3 + $0x1a8] sm:$0xff]  ;;  %v481_v38 = vld [vmem:[%s5501_s3 + $0x360] sm:$0xff]  ;;  %v499_v40 = vld [vmem:[%s5501_s3 + $0x3f0] sm:$0xff]  ;;  %v2798_v44 = vpack.c.bf16 %v408_v32, %v407_v31 }
  0x19   :  { %2783 = vmatpush3.bf16.msra.mxu0 %v2782_v55  ;;  %2871 = vmatpush3.bf16.msra.mxu1 %v2870_v8  ;;  %v482_v39 = vld [vmem:[%s5501_s3 + $0x368] sm:$0xff]  ;;  %v500_v41 = vld [vmem:[%s5501_s3 + $0x3f8] sm:$0xff]  ;;  %v409_v45 = vld [vmem:[%s5501_s3 + $0x120] sm:$0xff]  ;;  %v2800_v48 = vpack.c.bf16 %v426_v36, %v425_v33 }
  0x1a   :  { %2785 = vmatprep.subr.bf16.mxu0 %v2784_v60  ;;  %2873 = vmatprep.subr.bf16.mxu1 %v2872_v11  ;;  %v360_v42 = vld [vmem:[%s5502_s1 + $0x38] sm:$0xff]  ;;  %v410_v46 = vld [vmem:[%s5501_s3 + $0x128] sm:$0xff]  ;;  %v2882_v47 = vpack.c.bf16 %v482_v39, %v481_v38  ;;  %v427_v49 = vld [vmem:[%s5501_s3 + $0x1b0] sm:$0xff]  ;;  %v2884_v50 = vpack.c.bf16 %v500_v41, %v499_v40 }
  0x1b   :  { %v356_v43 = vld [vmem:[%s5502_s1 + $0x18] sm:$0xff]  ;;  %968 = vmatprep.mubr.f32.mxu1 %v360_v42  ;;  %v483_v51 = vld [vmem:[%s5501_s3 + $0x370] sm:$0xff]  ;;  %v549_v54 = vld [vmem:[%s5501_s3 + $0x580] sm:$0xff]  ;;  %v2802_v56 = vpack.c.bf16 %v410_v46, %v409_v45 }
  0x1c   :  { %v484_v52 = vld [vmem:[%s5501_s3 + $0x378] sm:$0xff]  ;;  %v550_v55 = vld [vmem:[%s5501_s3 + $0x588] sm:$0xff]  ;;  %v411_v57 = vld [vmem:[%s5501_s3 + $0x130] sm:$0xff] }
  0x1d   :  { %2787 = vmatpush3.bf16.msra.mxu0 %v2786_v5  ;;  %2875 = vmatpush3.bf16.msra.mxu1 %v2874_v20  ;;  %v428_v53 = vld [vmem:[%s5501_s3 + $0x1b8] sm:$0xff]  ;;  %v2886_v59 = vpack.c.bf16 %v484_v52, %v483_v51  ;;  %v429_v61 = vld [vmem:[%s5501_s3 + $0x1c0] sm:$0xff]  ;;  %v2920_v62 = vpack.c.bf16 %v550_v55, %v549_v54  ;;  %v534_v0 = vld [vmem:[%s5501_s3 + $0x508] sm:$0xff] }
  0x1e   :  { %2789 = vmatprep.subr.bf16.mxu0 %v2788_v9  ;;  %2877 = vmatprep.subr.bf16.mxu1 %v2876_v23  ;;  %v412_v58 = vld [vmem:[%s5501_s3 + $0x138] sm:$0xff]  ;;  %v2804_v60 = vpack.c.bf16 %v428_v53, %v427_v49  ;;  %v533_v63 = vld [vmem:[%s5501_s3 + $0x500] sm:$0xff]  ;;  %v430_v1 = vld [vmem:[%s5501_s3 + $0x1c8] sm:$0xff] }
  0x1f   :  { %v551_v2 = vld [vmem:[%s5501_s3 + $0x590] sm:$0xff]  ;;  %v552_v3 = vld [vmem:[%s5501_s3 + $0x598] sm:$0xff]  ;;  %v2806_v4 = vpack.c.bf16 %v412_v58, %v411_v57  ;;  %v413_v5 = vld [vmem:[%s5501_s3 + $0x140] sm:$0xff]  ;;  %v2922_v8 = vpack.c.bf16 %v534_v0, %v533_v63  ;;  %v2808_v9 = vpack.c.bf16 %v430_v1, %v429_v61 }
  0x20   :  { %v414_v6 = vld [vmem:[%s5501_s3 + $0x148] sm:$0xff]  ;;  %v359_v7 = vld [vmem:[%s5502_s1 + $0x30] sm:$0xff]  ;;  %v2924_v11 = vpack.c.bf16 %v552_v3, %v551_v2  ;;  %v536_v13 = vld [vmem:[%s5501_s3 + $0x518] sm:$0xff] }
  0x21   :  { %2791 = vmatpush3.bf16.msra.mxu0 %v2790_v17  ;;  %2879 = vmatpush3.bf16.msra.mxu1 %v2878_v34  ;;  %v431_v10 = vld [vmem:[%s5501_s3 + $0x1d0] sm:$0xff]  ;;  %v432_v14 = vld [vmem:[%s5501_s3 + $0x1d8] sm:$0xff]  ;;  %v553_v15 = vld [vmem:[%s5501_s3 + $0x5a0] sm:$0xff]  ;;  %v2810_v17 = vpack.c.bf16 %v414_v6, %v413_v5 }
  0x22   :  { %2793 = vmatprep.subr.bf16.mxu0 %v2792_v21  ;;  %2881 = vmatprep.subr.bf16.mxu1 %v2880_v37  ;;  %v535_v12 = vld [vmem:[%s5501_s3 + $0x510] sm:$0xff]  ;;  %v554_v16 = vld [vmem:[%s5501_s3 + $0x5a8] sm:$0xff]  ;;  %v416_v19 = vld [vmem:[%s5501_s3 + $0x158] sm:$0xff]  ;;  %v2812_v21 = vpack.c.bf16 %v432_v14, %v431_v10 }
  0x23   :  { %v415_v18 = vld [vmem:[%s5501_s3 + $0x150] sm:$0xff]  ;;  %v2926_v20 = vpack.c.bf16 %v536_v13, %v535_v12  ;;  %v433_v22 = vld [vmem:[%s5501_s3 + $0x1e0] sm:$0xff]  ;;  %v2928_v23 = vpack.c.bf16 %v554_v16, %v553_v15  ;;  %v538_v25 = vld [vmem:[%s5501_s3 + $0x528] sm:$0xff] }
  0x24   :  { %759 = vmatmul.mubr.f32.vlgmr.msra.gmra.mrb[0].mxu0 %v353_v29  ;;  %v537_v24 = vld [vmem:[%s5501_s3 + $0x520] sm:$0xff]  ;;  %v434_v26 = vld [vmem:[%s5501_s3 + $0x1e8] sm:$0xff]  ;;  %v555_v27 = vld [vmem:[%s5501_s3 + $0x5b0] sm:$0xff]  ;;  %v2814_v29 = vpack.c.bf16 %v416_v19, %v415_v18 }
  0x25   :  { %2795 = vmatpush3.bf16.msra.mxu0 %v2794_v30  ;;  %828 = vmatprep.mubr.f32.mxu0 %v356_v43  ;;  %v556_v28 = vld [vmem:[%s5501_s3 + $0x5b8] sm:$0xff]  ;;  %v417_v30 = vld [vmem:[%s5501_s3 + $0x160] sm:$0xff]  ;;  %v418_v31 = vld [vmem:[%s5501_s3 + $0x168] sm:$0xff]  ;;  %v2930_v32 = vpack.c.bf16 %v538_v25, %v537_v24  ;;  %v2816_v33 = vpack.c.bf16 %v434_v26, %v433_v22 }
  0x26   :  { %2797 = vmatprep.subr.bf16.mxu0 %v2796_v35  ;;  %2883 = vmatpush3.bf16.msra.mxu1 %v2882_v47  ;;  %v435_v34 = vld [vmem:[%s5501_s3 + $0x1f0] sm:$0xff]  ;;  %v2932_v35 = vpack.c.bf16 %v556_v28, %v555_v27  ;;  %v540_v37 = vld [vmem:[%s5501_s3 + $0x538] sm:$0xff]  ;;  %v557_v39 = vld [vmem:[%s5501_s3 + $0x5c0] sm:$0xff]  ;;  %v2818_v41 = vpack.c.bf16 %v418_v31, %v417_v30 }
  0x27   :  { %2885 = vmatprep.subr.bf16.mxu1 %v2884_v50  ;;  %v539_v36 = vld [vmem:[%s5501_s3 + $0x530] sm:$0xff]  ;;  %v436_v38 = vld [vmem:[%s5501_s3 + $0x1f8] sm:$0xff]  ;;  %v558_v40 = vld [vmem:[%s5501_s3 + $0x5c8] sm:$0xff] }
  0x28   :  { %v419_v42 = vld [vmem:[%s5501_s3 + $0x170] sm:$0xff]  ;;  %v420_v43 = vld [vmem:[%s5501_s3 + $0x178] sm:$0xff]  ;;  %v2820_v46 = vpack.c.bf16 %v436_v38, %v435_v34  ;;  %v453_v47 = vld [vmem:[%s5501_s3 + $0x280] sm:$0xff] }
  0x29   :  { %2799 = vmatpush3.bf16.msra.mxu0 %v2798_v44  ;;  %v2934_v44 = vpack.c.bf16 %v540_v37, %v539_v36  ;;  %v364_v45 = vld [vmem:[%s5502_s1 + $0x58] sm:$0xff]  ;;  %v541_v49 = vld [vmem:[%s5501_s3 + $0x540] sm:$0xff]  ;;  %v542_v50 = vld [vmem:[%s5501_s3 + $0x548] sm:$0xff]  ;;  %v2822_v54 = vpack.c.bf16 %v420_v43, %v419_v42 }
  0x2a   :  { %2801 = vmatprep.subr.bf16.mxu0 %v2800_v48  ;;  %2887 = vmatpush3.bf16.msra.mxu1 %v2886_v59  ;;  %v2936_v48 = vpack.c.bf16 %v558_v40, %v557_v39  ;;  %v454_v51 = vld [vmem:[%s5501_s3 + $0x288] sm:$0xff]  ;;  %v559_v52 = vld [vmem:[%s5501_s3 + $0x5d0] sm:$0xff]  ;;  %v560_v53 = vld [vmem:[%s5501_s3 + $0x5d8] sm:$0xff]  ;;  %v2938_v57 = vpack.c.bf16 %v542_v50, %v541_v49 }
  0x2b   :  { %2921 = vmatprep.subr.bf16.mxu1 %v2920_v62  ;;  %v437_v55 = vld [vmem:[%s5501_s3 + $0x200] sm:$0xff]  ;;  %v2824_v58 = vpack.c.bf16 %v454_v51, %v453_v47  ;;  %v455_v59 = vld [vmem:[%s5501_s3 + $0x290] sm:$0xff]  ;;  %v544_v62 = vld [vmem:[%s5501_s3 + $0x558] sm:$0xff] }
  0x2c   :  { %v543_v61 = vld [vmem:[%s5501_s3 + $0x550] sm:$0xff]  ;;  %v456_v63 = vld [vmem:[%s5501_s3 + $0x298] sm:$0xff]  ;;  %v561_v0 = vld [vmem:[%s5501_s3 + $0x5e0] sm:$0xff] }
  0x2d   :  { %2803 = vmatpush3.bf16.msra.mxu0 %v2802_v56  ;;  %969 = vmatmul.mubr.f32.vlgmr.msra.gmra.mrb[0].mxu1 %v359_v7  ;;  %v438_v56 = vld [vmem:[%s5501_s3 + $0x208] sm:$0xff]  ;;  %v355_v2 = vld [vmem:[%s5502_s1 + $0x10] sm:$0xff]  ;;  %v440_v5 = vld [vmem:[%s5501_s3 + $0x218] sm:$0xff]  ;;  %v2942_v6 = vpack.c.bf16 %v544_v62, %v543_v61  ;;  %v2828_v7 = vpack.c.bf16 %v456_v63, %v455_v59 }
  0x2e   :  { %2805 = vmatprep.subr.bf16.mxu0 %v2804_v60  ;;  %2923 = vmatpush3.bf16.msra.mxu1 %v2922_v8  ;;  %v2940_v60 = vpack.c.bf16 %v560_v53, %v559_v52  ;;  %v562_v1 = vld [vmem:[%s5501_s3 + $0x5e8] sm:$0xff]  ;;  %v2826_v3 = vpack.c.bf16 %v438_v56, %v437_v55  ;;  %v457_v8 = vld [vmem:[%s5501_s3 + $0x2a0] sm:$0xff]  ;;  %v563_v13 = vld [vmem:[%s5501_s3 + $0x5f0] sm:$0xff] }
  0x2f   :  { %2925 = vmatprep.subr.bf16.mxu1 %v2924_v11  ;;  %1108 = vmatprep.mubr.f32.mxu1 %v364_v45  ;;  %v545_v10 = vld [vmem:[%s5501_s3 + $0x560] sm:$0xff]  ;;  %v546_v11 = vld [vmem:[%s5501_s3 + $0x568] sm:$0xff]  ;;  %v564_v14 = vld [vmem:[%s5501_s3 + $0x5f8] sm:$0xff] }
  0x30   :  { %v458_v12 = vld [vmem:[%s5501_s3 + $0x2a8] sm:$0xff]  ;;  %v2946_v19 = vpack.c.bf16 %v546_v11, %v545_v10  ;;  %v2948_v22 = vpack.c.bf16 %v564_v14, %v563_v13  ;;  %v548_v24 = vld [vmem:[%s5501_s3 + $0x578] sm:$0xff]  ;;  %v613_v26 = vld [vmem:[%s5501_s3 + $0x780] sm:$0xff] }
  0x31   :  { %2807 = vmatpush3.bf16.msra.mxu0 %v2806_v4  ;;  %v439_v4 = vld [vmem:[%s5501_s3 + $0x210] sm:$0xff]  ;;  %v358_v15 = vld [vmem:[%s5502_s1 + $0x28] sm:$0xff]  ;;  %v460_v25 = vld [vmem:[%s5501_s3 + $0x2b8] sm:$0xff] }
  0x32   :  { %2809 = vmatprep.subr.bf16.mxu0 %v2808_v9  ;;  %2927 = vmatpush3.bf16.msra.mxu1 %v2926_v20  ;;  %v2944_v9 = vpack.c.bf16 %v562_v1, %v561_v0  ;;  %v2830_v16 = vpack.c.bf16 %v440_v5, %v439_v4  ;;  %v442_v18 = vld [vmem:[%s5501_s3 + $0x228] sm:$0xff]  ;;  %v2832_v20 = vpack.c.bf16 %v458_v12, %v457_v8  ;;  %v444_v30 = vld [vmem:[%s5501_s3 + $0x238] sm:$0xff]  ;;  %v615_v38 = vld [vmem:[%s5501_s3 + $0x790] sm:$0xff] }
  0x33   :  { %2929 = vmatprep.subr.bf16.mxu1 %v2928_v23  ;;  %v547_v23 = vld [vmem:[%s5501_s3 + $0x570] sm:$0xff]  ;;  %v614_v27 = vld [vmem:[%s5501_s3 + $0x788] sm:$0xff]  ;;  %v616_v39 = vld [vmem:[%s5501_s3 + $0x798] sm:$0xff] }
  0x34   :  { %v2950_v31 = vpack.c.bf16 %v548_v24, %v547_v23  ;;  %v2984_v34 = vpack.c.bf16 %v614_v27, %v613_v26  ;;  %v598_v36 = vld [vmem:[%s5501_s3 + $0x708] sm:$0xff]  ;;  %v363_v43 = vld [vmem:[%s5502_s1 + $0x50] sm:$0xff]  ;;  %v2988_v47 = vpack.c.bf16 %v616_v39, %v615_v38  ;;  %v600_v49 = vld [vmem:[%s5501_s3 + $0x718] sm:$0xff] }
  0x35   :  { %2811 = vmatpush3.bf16.msra.mxu0 %v2810_v17  ;;  %v441_v17 = vld [vmem:[%s5501_s3 + $0x220] sm:$0xff]  ;;  %v462_v37 = vld [vmem:[%s5501_s3 + $0x2c8] sm:$0xff]  ;;  %v464_v50 = vld [vmem:[%s5501_s3 + $0x2d8] sm:$0xff] }
  0x36   :  { %2813 = vmatprep.subr.bf16.mxu0 %v2812_v21  ;;  %2931 = vmatpush3.bf16.msra.mxu1 %v2930_v32  ;;  %v459_v21 = vld [vmem:[%s5501_s3 + $0x2b0] sm:$0xff]  ;;  %v2834_v28 = vpack.c.bf16 %v442_v18, %v441_v17  ;;  %v446_v42 = vld [vmem:[%s5501_s3 + $0x248] sm:$0xff]  ;;  %v617_v51 = vld [vmem:[%s5501_s3 + $0x7a0] sm:$0xff] }
  0x37   :  { %2933 = vmatprep.subr.bf16.mxu1 %v2932_v35  ;;  %v2836_v32 = vpack.c.bf16 %v460_v25, %v459_v21  ;;  %v597_v35 = vld [vmem:[%s5501_s3 + $0x700] sm:$0xff]  ;;  %v618_v52 = vld [vmem:[%s5501_s3 + $0x7a8] sm:$0xff]  ;;  %v368_v53 = vld [vmem:[%s5502_s1 + $0x78] sm:$0xff] }
  0x38   :  { %v447_v55 = vld [vmem:[%s5501_s3 + $0x250] sm:$0xff]  ;;  %v448_v56 = vld [vmem:[%s5501_s3 + $0x258] sm:$0xff]  ;;  %v465_v59 = vld [vmem:[%s5501_s3 + $0x2e0] sm:$0xff] }
  0x39   :  { %2815 = vmatpush3.bf16.msra.mxu0 %v2814_v29  ;;  %v443_v29 = vld [vmem:[%s5501_s3 + $0x230] sm:$0xff]  ;;  %v601_v61 = vld [vmem:[%s5501_s3 + $0x720] sm:$0xff]  ;;  %v602_v62 = vld [vmem:[%s5501_s3 + $0x728] sm:$0xff] }
  0x3a   :  { %2817 = vmatprep.subr.bf16.mxu0 %v2816_v33  ;;  %2935 = vmatpush3.bf16.msra.mxu1 %v2934_v44  ;;  %v461_v33 = vld [vmem:[%s5501_s3 + $0x2c0] sm:$0xff]  ;;  %v2838_v40 = vpack.c.bf16 %v444_v30, %v443_v29  ;;  %v2986_v44 = vpack.c.bf16 %v598_v36, %v597_v35  ;;  %v466_v63 = vld [vmem:[%s5501_s3 + $0x2e8] sm:$0xff]  ;;  %v619_v0 = vld [vmem:[%s5501_s3 + $0x7b0] sm:$0xff]  ;;  %v2994_v5 = vpack.c.bf16 %v602_v62, %v601_v61 }
  0x3b   :  { %2937 = vmatprep.subr.bf16.mxu1 %v2936_v48  ;;  %v2840_v45 = vpack.c.bf16 %v462_v37, %v461_v33  ;;  %v599_v48 = vld [vmem:[%s5501_s3 + $0x710] sm:$0xff]  ;;  %v620_v1 = vld [vmem:[%s5501_s3 + $0x7b8] sm:$0xff]  ;;  %v450_v4 = vld [vmem:[%s5501_s3 + $0x268] sm:$0xff] }
  0x3c   :  { %v2996_v8 = vpack.c.bf16 %v620_v1, %v619_v0  ;;  %v604_v10 = vld [vmem:[%s5501_s3 + $0x738] sm:$0xff]  ;;  %v621_v12 = vld [vmem:[%s5501_s3 + $0x7c0] sm:$0xff]  ;;  %v622_v13 = vld [vmem:[%s5501_s3 + $0x7c8] sm:$0xff] }
  0x3d   :  { %2819 = vmatpush3.bf16.msra.mxu0 %v2818_v41  ;;  %v445_v41 = vld [vmem:[%s5501_s3 + $0x240] sm:$0xff]  ;;  %v468_v11 = vld [vmem:[%s5501_s3 + $0x2f8] sm:$0xff]  ;;  %v518_v23 = vld [vmem:[%s5501_s3 + $0x488] sm:$0xff] }
  0x3e   :  { %2821 = vmatprep.subr.bf16.mxu0 %v2820_v46  ;;  %2939 = vmatpush3.bf16.msra.mxu1 %v2938_v57  ;;  %v463_v46 = vld [vmem:[%s5501_s3 + $0x2d0] sm:$0xff]  ;;  %v2990_v57 = vpack.c.bf16 %v600_v49, %v599_v48  ;;  %v605_v21 = vld [vmem:[%s5501_s3 + $0x740] sm:$0xff]  ;;  %v624_v25 = vld [vmem:[%s5501_s3 + $0x7d8] sm:$0xff] }
  0x3f   :  { %2941 = vmatprep.subr.bf16.mxu1 %v2940_v60  ;;  %v2992_v60 = vpack.c.bf16 %v618_v52, %v617_v51  ;;  %v623_v24 = vld [vmem:[%s5501_s3 + $0x7d0] sm:$0xff]  ;;  %v501_v27 = vld [vmem:[%s5501_s3 + $0x400] sm:$0xff]  ;;  %v520_v35 = vld [vmem:[%s5501_s3 + $0x498] sm:$0xff] }
  0x40   :  { %v607_v33 = vld [vmem:[%s5501_s3 + $0x750] sm:$0xff]  ;;  %v625_v36 = vld [vmem:[%s5501_s3 + $0x7e0] sm:$0xff]  ;;  %v626_v37 = vld [vmem:[%s5501_s3 + $0x7e8] sm:$0xff] }
  0x41   :  { %2823 = vmatpush3.bf16.msra.mxu0 %v2822_v54  ;;  %v2842_v54 = vpack.c.bf16 %v446_v42, %v445_v41  ;;  %v357_v38 = vld [vmem:[%s5502_s1 + $0x20] sm:$0xff]  ;;  %v504_v41 = vld [vmem:[%s5501_s3 + $0x418] sm:$0xff]  ;;  %v522_v48 = vld [vmem:[%s5501_s3 + $0x4a8] sm:$0xff] }
  0x42   :  { %2825 = vmatprep.subr.bf16.mxu0 %v2824_v58  ;;  %2943 = vmatpush3.bf16.msra.mxu1 %v2942_v6  ;;  %v2844_v58 = vpack.c.bf16 %v464_v50, %v463_v46  ;;  %v2848_v6 = vpack.c.bf16 %v466_v63, %v465_v59  ;;  %v609_v46 = vld [vmem:[%s5501_s3 + $0x760] sm:$0xff]  ;;  %v627_v49 = vld [vmem:[%s5501_s3 + $0x7f0] sm:$0xff]  ;;  %v628_v50 = vld [vmem:[%s5501_s3 + $0x7f8] sm:$0xff] }
  0x43   :  { %2945 = vmatprep.subr.bf16.mxu1 %v2944_v9  ;;  %v603_v9 = vld [vmem:[%s5501_s3 + $0x730] sm:$0xff]  ;;  %v362_v51 = vld [vmem:[%s5502_s1 + $0x48] sm:$0xff]  ;;  %v612_v59 = vld [vmem:[%s5501_s3 + $0x778] sm:$0xff] }
  0x44   :  { %829 = vmatmul.mubr.f32.vlgmr.msra.gmra.mrb[2].mxu0 %v355_v2  ;;  %v2846_v2 = vpack.c.bf16 %v448_v56, %v447_v55  ;;  %v2998_v17 = vpack.c.bf16 %v604_v10, %v603_v9  ;;  %v506_v56 = vld [vmem:[%s5501_s3 + $0x428] sm:$0xff]  ;;  %v524_v61 = vld [vmem:[%s5501_s3 + $0x4b8] sm:$0xff]  ;;  %v507_v63 = vld [vmem:[%s5501_s3 + $0x430] sm:$0xff] }
  0x45   :  { %2827 = vmatpush3.bf16.msra.mxu0 %v2826_v3  ;;  %898 = vmatprep.mubr.f32.mxu0 %v358_v15  ;;  %v449_v3 = vld [vmem:[%s5501_s3 + $0x260] sm:$0xff]  ;;  %v451_v15 = vld [vmem:[%s5501_s3 + $0x270] sm:$0xff] }
  0x46   :  { %2829 = vmatprep.subr.bf16.mxu0 %v2828_v7  ;;  %2947 = vmatpush3.bf16.msra.mxu1 %v2946_v19  ;;  %v467_v7 = vld [vmem:[%s5501_s3 + $0x2f0] sm:$0xff]  ;;  %v2850_v14 = vpack.c.bf16 %v450_v4, %v449_v3  ;;  %v517_v19 = vld [vmem:[%s5501_s3 + $0x480] sm:$0xff]  ;;  %v662_v4 = vld [vmem:[%s5501_s3 + $0x908] sm:$0xff] }
  0x47   :  { %2949 = vmatprep.subr.bf16.mxu1 %v2948_v22  ;;  %v2852_v18 = vpack.c.bf16 %v468_v11, %v467_v7  ;;  %v606_v22 = vld [vmem:[%s5501_s3 + $0x748] sm:$0xff]  ;;  %v2888_v30 = vpack.c.bf16 %v518_v23, %v517_v19  ;;  %v661_v3 = vld [vmem:[%s5501_s3 + $0x900] sm:$0xff]  ;;  %v367_v9 = vld [vmem:[%s5502_s1 + $0x70] sm:$0xff] }
  0x48   :  { %v3002_v29 = vpack.c.bf16 %v606_v22, %v605_v21  ;;  %v3049_v10 = vpack.c.bf16 %v662_v4, %v661_v3  ;;  %v512_v23 = vld [vmem:[%s5501_s3 + $0x458] sm:$0xff]  ;;  %v569_v3 = vld [vmem:[%s5501_s3 + $0x620] sm:$0xff] }
  0x49   :  { %2831 = vmatpush3.bf16.msra.mxu0 %v2830_v16  ;;  %v452_v16 = vld [vmem:[%s5501_s3 + $0x278] sm:$0xff] }
  0x4a   :  { %2833 = vmatprep.subr.bf16.mxu0 %v2832_v20  ;;  %2951 = vmatpush3.bf16.msra.mxu1 %v2950_v31  ;;  %v3000_v20 = vpack.c.bf16 %v622_v13, %v621_v12  ;;  %v2854_v26 = vpack.c.bf16 %v452_v16, %v451_v15  ;;  %v519_v31 = vld [vmem:[%s5501_s3 + $0x490] sm:$0xff]  ;;  %v510_v12 = vld [vmem:[%s5501_s3 + $0x448] sm:$0xff]  ;;  %v3414_v13 = vmov 0.0|0.0   ;;  %v664_v15 = vld [vmem:[%s5501_s3 + $0x918] sm:$0xff] }
  0x4b   :  { %2985 = vmatprep.subr.bf16.mxu1 %v2984_v34  ;;  %v608_v34 = vld [vmem:[%s5501_s3 + $0x758] sm:$0xff]  ;;  %v527_v16 = vld [vmem:[%s5501_s3 + $0x4d0] sm:$0xff] }
  0x4c   :  { %v3006_v42 = vpack.c.bf16 %v608_v34, %v607_v33  ;;  %v667_v33 = vld [vmem:[%s5501_s3 + $0x930] sm:$0xff]  ;;  %v668_v34 = vld [vmem:[%s5501_s3 + $0x938] sm:$0xff] }
  0x4d   :  { %2835 = vmatpush3.bf16.msra.mxu0 %v2834_v28  ;;  %1109 = vmatmul.mubr.f32.vlgmr.msra.gmra.mrb[2].mxu1 %v363_v43  ;;  %v502_v28 = vld [vmem:[%s5501_s3 + $0x408] sm:$0xff]  ;;  %v2892_v43 = vpack.c.bf16 %v520_v35, %v519_v31  ;;  %v531_v35 = vld [vmem:[%s5501_s3 + $0x4f0] sm:$0xff] }
  0x4e   :  { %2837 = vmatprep.subr.bf16.mxu0 %v2836_v32  ;;  %2987 = vmatpush3.bf16.msra.mxu1 %v2986_v44  ;;  %v3004_v32 = vpack.c.bf16 %v624_v25, %v623_v24  ;;  %v2890_v39 = vpack.c.bf16 %v502_v28, %v501_v27  ;;  %v521_v44 = vld [vmem:[%s5501_s3 + $0x4a0] sm:$0xff]  ;;  %v666_v25 = vld [vmem:[%s5501_s3 + $0x928] sm:$0xff] }
  0x4f   :  { %2989 = vmatprep.subr.bf16.mxu1 %v2988_v47  ;;  %1248 = vmatprep.mubr.f32.mxu1 %v368_v53  ;;  %v610_v47 = vld [vmem:[%s5501_s3 + $0x768] sm:$0xff]  ;;  %v505_v53 = vld [vmem:[%s5501_s3 + $0x420] sm:$0xff]  ;;  %v2896_v55 = vpack.c.bf16 %v522_v48, %v521_v44 }
  0x50   :  { %v2898_v62 = vpack.c.bf16 %v506_v56, %v505_v53  ;;  %v665_v24 = vld [vmem:[%s5501_s3 + $0x920] sm:$0xff]  ;;  %v530_v27 = vld [vmem:[%s5501_s3 + $0x4e8] sm:$0xff]  ;;  %v583_v53 = vld [vmem:[%s5501_s3 + $0x690] sm:$0xff] }
  0x51   :  { %2839 = vmatpush3.bf16.msra.mxu0 %v2838_v40  ;;  %v503_v40 = vld [vmem:[%s5501_s3 + $0x410] sm:$0xff]  ;;  %v581_v44 = vld [vmem:[%s5501_s3 + $0x680] sm:$0xff] }
  0x52   :  { %2841 = vmatprep.subr.bf16.mxu0 %v2840_v45  ;;  %2991 = vmatpush3.bf16.msra.mxu1 %v2990_v57  ;;  %v3008_v45 = vpack.c.bf16 %v626_v37, %v625_v36  ;;  %v2894_v52 = vpack.c.bf16 %v504_v41, %v503_v40  ;;  %v3012_v57 = vpack.c.bf16 %v628_v50, %v627_v49  ;;  %v532_v36 = vld [vmem:[%s5501_s3 + $0x4f8] sm:$0xff]  ;;  %v566_v50 = vld [vmem:[%s5501_s3 + $0x608] sm:$0xff] }
  0x53   :  { %2993 = vmatprep.subr.bf16.mxu1 %v2992_v60  ;;  %v523_v60 = vld [vmem:[%s5501_s3 + $0x4b0] sm:$0xff]  ;;  %v2916_v40 = vpack.c.bf16 %v532_v36, %v531_v35  ;;  %v516_v41 = vld [vmem:[%s5501_s3 + $0x478] sm:$0xff]  ;;  %v681_v35 = vld [vmem:[%s5501_s3 + $0x9a0] sm:$0xff] }
  0x54   :  { %v2900_v1 = vpack.c.bf16 %v524_v61, %v523_v60  ;;  %v568_v60 = vld [vmem:[%s5501_s3 + $0x618] sm:$0xff]  ;;  %v673_v61 = vld [vmem:[%s5501_s3 + $0x960] sm:$0xff]  ;;  %v682_v36 = vld [vmem:[%s5501_s3 + $0x9a8] sm:$0xff] }
  0x55   :  { %2843 = vmatpush3.bf16.msra.mxu0 %v2842_v54  ;;  %v3010_v54 = vpack.c.bf16 %v610_v47, %v609_v46  ;;  %v565_v47 = vld [vmem:[%s5501_s3 + $0x600] sm:$0xff] }
  0x56   :  { %2845 = vmatprep.subr.bf16.mxu0 %v2844_v58  ;;  %2995 = vmatpush3.bf16.msra.mxu1 %v2994_v5  ;;  %v611_v58 = vld [vmem:[%s5501_s3 + $0x770] sm:$0xff]  ;;  %v525_v5 = vld [vmem:[%s5501_s3 + $0x4c0] sm:$0xff]  ;;  %v2954_v56 = vpack.c.bf16 %v566_v50, %v565_v47  ;;  %v596_v47 = vld [vmem:[%s5501_s3 + $0x6f8] sm:$0xff] }
  0x57   :  { %2997 = vmatprep.subr.bf16.mxu1 %v2996_v8  ;;  %v3014_v0 = vpack.c.bf16 %v612_v59, %v611_v58  ;;  %v509_v8 = vld [vmem:[%s5501_s3 + $0x440] sm:$0xff] }
  0x58   :  { %v2906_v19 = vpack.c.bf16 %v510_v12, %v509_v8  ;;  %v676_v8 = vld [vmem:[%s5501_s3 + $0x978] sm:$0xff]  ;;  %v571_v12 = vld [vmem:[%s5501_s3 + $0x630] sm:$0xff] }
  0x59   :  { %2847 = vmatpush3.bf16.msra.mxu0 %v2846_v2  ;;  %v508_v2 = vld [vmem:[%s5501_s3 + $0x438] sm:$0xff] }
  0x5a   :  { %2849 = vmatprep.subr.bf16.mxu0 %v2848_v6  ;;  %2999 = vmatpush3.bf16.msra.mxu1 %v2998_v17  ;;  %v526_v6 = vld [vmem:[%s5501_s3 + $0x4c8] sm:$0xff]  ;;  %v2902_v7 = vpack.c.bf16 %v508_v2, %v507_v63  ;;  %v528_v17 = vld [vmem:[%s5501_s3 + $0x4d8] sm:$0xff]  ;;  %v585_v63 = vld [vmem:[%s5501_s3 + $0x6a0] sm:$0xff] }
  0x5b   :  { %3001 = vmatprep.subr.bf16.mxu1 %v3000_v20  ;;  %v2904_v11 = vpack.c.bf16 %v526_v6, %v525_v5  ;;  %v511_v20 = vld [vmem:[%s5501_s3 + $0x450] sm:$0xff]  ;;  %v2908_v22 = vpack.c.bf16 %v528_v17, %v527_v16  ;;  %v570_v6 = vld [vmem:[%s5501_s3 + $0x628] sm:$0xff]  ;;  %v572_v16 = vld [vmem:[%s5501_s3 + $0x638] sm:$0xff] }
  0x5c   :  { %v2910_v28 = vpack.c.bf16 %v512_v23, %v511_v20  ;;  %v677_v17 = vld [vmem:[%s5501_s3 + $0x980] sm:$0xff]  ;;  %v590_v20 = vld [vmem:[%s5501_s3 + $0x6c8] sm:$0xff] }
  0x5d   :  { %2851 = vmatpush3.bf16.msra.mxu0 %v2850_v14  ;;  %v663_v14 = vld [vmem:[%s5501_s3 + $0x910] sm:$0xff] }
  0x5e   :  { %2853 = vmatprep.subr.bf16.mxu0 %v2852_v18  ;;  %3003 = vmatpush3.bf16.msra.mxu1 %v3002_v29  ;;  %v372_v18 = vld [vmem:[%s5502_s1 + $0x98] sm:$0xff]  ;;  %v3052_v21 = vpack.c.bf16 %v664_v15, %v663_v14  ;;  %v513_v29 = vld [vmem:[%s5501_s3 + $0x460] sm:$0xff] }
  0x5f   :  { %3005 = vmatprep.subr.bf16.mxu1 %v3004_v32  ;;  %v514_v32 = vld [vmem:[%s5501_s3 + $0x468] sm:$0xff] }
  0x60   :  { %v2914_v37 = vpack.c.bf16 %v514_v32, %v513_v29  ;;  %v592_v29 = vld [vmem:[%s5501_s3 + $0x6d8] sm:$0xff] }
  0x61   :  { %2855 = vmatpush3.bf16.msra.mxu0 %v2854_v26  ;;  %v529_v26 = vld [vmem:[%s5501_s3 + $0x4e0] sm:$0xff] }
  0x62   :  { %2889 = vmatprep.subr.bf16.mxu0 %v2888_v30  ;;  %3007 = vmatpush3.bf16.msra.mxu1 %v3006_v42  ;;  %v3055_v30 = vpack.c.bf16 %v666_v25, %v665_v24  ;;  %v2912_v31 = vpack.c.bf16 %v530_v27, %v529_v26  ;;  %v669_v42 = vld [vmem:[%s5501_s3 + $0x940] sm:$0xff]  ;;  %v574_v25 = vld [vmem:[%s5501_s3 + $0x648] sm:$0xff]  ;;  %v679_v26 = vld [vmem:[%s5501_s3 + $0x990] sm:$0xff] }
  0x63   :  { %3009 = vmatprep.subr.bf16.mxu1 %v3008_v45  ;;  %v582_v45 = vld [vmem:[%s5501_s3 + $0x688] sm:$0xff]  ;;  %v680_v27 = vld [vmem:[%s5501_s3 + $0x998] sm:$0xff] }
  0x64   :  { %899 = vmatmul.mubr.f32.vlgmr.msra.gmra.mrb[4].mxu0 %v357_v38  ;;  %v515_v38 = vld [vmem:[%s5501_s3 + $0x470] sm:$0xff]  ;;  %v2952_v49 = vpack.c.bf16 %v582_v45, %v581_v44  ;;  %v3076_v32 = vpack.c.bf16 %v680_v27, %v679_v26  ;;  %v684_v45 = vld [vmem:[%s5501_s3 + $0x9b8] sm:$0xff]  ;;  %v76_v27 = vld [vmem:[%s5503_s2 + $0x120] sm:$0xff] }
  0x65   :  { %2891 = vmatpush3.bf16.msra.mxu0 %v2890_v39  ;;  %1038 = vmatprep.mubr.f32.mxu0 %v362_v51  ;;  %v3058_v39 = vpack.c.bf16 %v668_v34, %v667_v33  ;;  %v2918_v46 = vpack.c.bf16 %v516_v41, %v515_v38  ;;  %v671_v51 = vld [vmem:[%s5501_s3 + $0x950] sm:$0xff]  ;;  %v576_v34 = vld [vmem:[%s5501_s3 + $0x658] sm:$0xff]  ;;  %v594_v38 = vld [vmem:[%s5501_s3 + $0x6e8] sm:$0xff]  ;;  %v3079_v41 = vpack.c.bf16 %v682_v36, %v681_v35 }
  0x66   :  { %2893 = vmatprep.subr.bf16.mxu0 %v2892_v43  ;;  %3011 = vmatpush3.bf16.msra.mxu1 %v3010_v54  ;;  %v670_v43 = vld [vmem:[%s5501_s3 + $0x948] sm:$0xff]  ;;  %v584_v54 = vld [vmem:[%s5501_s3 + $0x698] sm:$0xff]  ;;  %v683_v44 = vld [vmem:[%s5501_s3 + $0x9b0] sm:$0xff] }
  0x67   :  { %3013 = vmatprep.subr.bf16.mxu1 %v3012_v57  ;;  %v3061_v48 = vpack.c.bf16 %v670_v43, %v669_v42  ;;  %v567_v57 = vld [vmem:[%s5501_s3 + $0x610] sm:$0xff]  ;;  %v2956_v59 = vpack.c.bf16 %v584_v54, %v583_v53  ;;  %v578_v43 = vld [vmem:[%s5501_s3 + $0x668] sm:$0xff]  ;;  %v645_v53 = vld [vmem:[%s5501_s3 + $0x880] sm:$0xff] }
  0x68   :  { %v2958_v2 = vpack.c.bf16 %v568_v60, %v567_v57  ;;  %v646_v54 = vld [vmem:[%s5501_s3 + $0x888] sm:$0xff]  ;;  %v629_v57 = vld [vmem:[%s5501_s3 + $0x800] sm:$0xff] }
  0x69   :  { %2895 = vmatpush3.bf16.msra.mxu0 %v2894_v52  ;;  %v672_v52 = vld [vmem:[%s5501_s3 + $0x958] sm:$0xff]  ;;  %v72_v60 = vld [vmem:[%s5503_s2 + $0x100] sm:$0xff] }
  0x6a   :  { %2897 = vmatprep.subr.bf16.mxu0 %v2896_v55  ;;  %3015 = vmatpush3.bf16.msra.mxu1 %v3014_v0  ;;  %v361_v55 = vld [vmem:[%s5502_s1 + $0x40] sm:$0xff]  ;;  %v3064_v58 = vpack.c.bf16 %v672_v52, %v671_v51  ;;  %v586_v0 = vld [vmem:[%s5501_s3 + $0x6a8] sm:$0xff]  ;;  %v579_v51 = vld [vmem:[%s5501_s3 + $0x670] sm:$0xff] }
  0x6b   :  { %3048 = vmatprep.subr.bf16.mxu1 %v3414_v13  ;;  %v2960_v5 = vpack.c.bf16 %v586_v0, %v585_v63  ;;  %v580_v52 = vld [vmem:[%s5501_s3 + $0x678] sm:$0xff]  ;;  %v3415_v63 = vmov 0.0   ;;  %v685_v0 = vld [vmem:[%s5501_s3 + $0x9c0] sm:$0xf] }
  0x6d   :  { %2899 = vmatpush3.bf16.msra.mxu0 %v2898_v62  ;;  %1249 = vmatmul.mubr.f32.vlgmr.msra.gmra.mrb[4].mxu1 %v367_v9  ;;  %v674_v62 = vld [vmem:[%s5501_s3 + $0x968] sm:$0xff]  ;;  %v587_v9 = vld [vmem:[%s5501_s3 + $0x6b0] sm:$0xff] }
  0x6e   :  { %2901 = vmatprep.subr.bf16.mxu0 %v2900_v1  ;;  %3050 = vmatpush1.bf16.msra.mxu1 %v3049_v10  ;;  %v366_v1 = vld [vmem:[%s5502_s1 + $0x68] sm:$0xff]  ;;  %v3067_v4 = vpack.c.bf16 %v674_v62, %v673_v61  ;;  %v588_v10 = vld [vmem:[%s5501_s3 + $0x6b8] sm:$0xff]  ;;  %v3016_v62 = vpack.c.bf16 %v646_v54, %v645_v53 }
  0x6f   :  { %3051 = vmatprep.subr.bf16.mxu1 %v3414_v13  ;;  %2126 = vmatprep.mubr.msk.f32.mxu1 %vm686_vm0, %v372_v18  ;;  %v2964_v15 = vpack.c.bf16 %v588_v10, %v587_v9  ;;  %v678_v18 = vld [vmem:[%s5501_s3 + $0x988] sm:$0xff]  ;;  %v631_v10 = vld [vmem:[%s5501_s3 + $0x810] sm:$0xff] }
  0x70   :  { %v3073_v23 = vpack.c.bf16 %v678_v18, %v677_v17  ;;  %v73_v61 = vld [vmem:[%s5503_s2 + $0x108] sm:$0xff]  ;;  %v92_v17 = vld [vmem:[%s5503_s2 + $0x1a0] sm:$0xff] }
  0x71   :  { %2903 = vmatpush3.bf16.msra.mxu0 %v2902_v7  ;;  %v675_v7 = vld [vmem:[%s5501_s3 + $0x970] sm:$0xff]  ;;  %v93_v18 = vld [vmem:[%s5503_s2 + $0x1a8] sm:$0xff] }
  0x72   :  { %2905 = vmatprep.subr.bf16.mxu0 %v2904_v11  ;;  %3053 = vmatpush1.bf16.msra.mxu1 %v3052_v21  ;;  %v2962_v11 = vpack.c.bf16 %v570_v6, %v569_v3  ;;  %v3070_v14 = vpack.c.bf16 %v676_v8, %v675_v7  ;;  %v2966_v21 = vpack.c.bf16 %v572_v16, %v571_v12  ;;  %v91_v3 = vld [vmem:[%s5503_s2 + $0x198] sm:$0xff]  ;;  %v365_v6 = vld [vmem:[%s5502_s1 + $0x60] sm:$0xff]  ;;  %v371_v7 = vld [vmem:[%s5502_s1 + $0x90] sm:$0xff] }
  0x73   :  { %3054 = vmatprep.subr.bf16.mxu1 %v3414_v13  ;;  %v3118_v8 = vpack.c.bf16 %v73_v61, %v72_v60  ;;  %v74_v12 = vld [vmem:[%s5503_s2 + $0x110] sm:$0xff]  ;;  %v632_v16 = vld [vmem:[%s5501_s3 + $0x818] sm:$0xff]  ;;  %v3124_v26 = vpack.c.bf16 %v93_v18, %v92_v17  ;;  %v638_v54 = vld [vmem:[%s5501_s3 + $0x848] sm:$0xff] }
  0x74   :  { %v639_v61 = vld [vmem:[%s5501_s3 + $0x850] sm:$0xff]  ;;  %v103_v18 = vld [vmem:[%s5503_s2 + $0x1f8] sm:$0xff] }
  0x75   :  { %2907 = vmatpush3.bf16.msra.mxu0 %v2906_v19  ;;  %v589_v19 = vld [vmem:[%s5501_s3 + $0x6c0] sm:$0xff]  ;;  %v102_v17 = vld [vmem:[%s5503_s2 + $0x1f0] sm:$0xff] }
  0x76   :  { %2909 = vmatprep.subr.bf16.mxu0 %v2908_v22  ;;  %3056 = vmatpush1.bf16.msra.mxu1 %v3055_v30  ;;  %v573_v22 = vld [vmem:[%s5501_s3 + $0x640] sm:$0xff]  ;;  %v2968_v24 = vpack.c.bf16 %v590_v20, %v589_v19  ;;  %v650_v20 = vld [vmem:[%s5501_s3 + $0x8a8] sm:$0xff] }
  0x77   :  { %3057 = vmatprep.subr.bf16.mxu1 %v3414_v13  ;;  %v2970_v30 = vpack.c.bf16 %v574_v25, %v573_v22  ;;  %v649_v19 = vld [vmem:[%s5501_s3 + $0x8a0] sm:$0xff] }
  0x78   :  { %v633_v25 = vld [vmem:[%s5501_s3 + $0x820] sm:$0xff] }
  0x79   :  { %2911 = vmatpush3.bf16.msra.mxu0 %v2910_v28  ;;  %v591_v28 = vld [vmem:[%s5501_s3 + $0x6d0] sm:$0xff] }
  0x7a   :  { %2913 = vmatprep.subr.bf16.mxu0 %v2912_v31  ;;  %3059 = vmatpush1.bf16.msra.mxu1 %v3058_v39  ;;  %v575_v31 = vld [vmem:[%s5501_s3 + $0x650] sm:$0xff]  ;;  %v2972_v33 = vpack.c.bf16 %v592_v29, %v591_v28  ;;  %v77_v28 = vld [vmem:[%s5503_s2 + $0x128] sm:$0xff]  ;;  %v3024_v29 = vpack.c.bf16 %v650_v20, %v649_v19  ;;  %v660_v20 = vld [vmem:[%s5501_s3 + $0x8f8] sm:$0xff] }
  0x7b   :  { %3060 = vmatprep.subr.bf16.mxu1 %v3414_v13  ;;  %v2974_v39 = vpack.c.bf16 %v576_v34, %v575_v31  ;;  %v94_v31 = vld [vmem:[%s5503_s2 + $0x1b0] sm:$0xff]  ;;  %v652_v34 = vld [vmem:[%s5501_s3 + $0x8b8] sm:$0xff]  ;;  %v3126_v35 = vpack.c.bf16 %v77_v28, %v76_v27 }
  0x7c   :  { %v659_v19 = vld [vmem:[%s5501_s3 + $0x8f0] sm:$0xff]  ;;  %v644_v28 = vld [vmem:[%s5501_s3 + $0x878] sm:$0xff] }
  0x7d   :  { %2915 = vmatpush3.bf16.msra.mxu0 %v2914_v37  ;;  %v593_v37 = vld [vmem:[%s5501_s3 + $0x6e0] sm:$0xff]  ;;  %v3044_v27 = vpack.c.bf16 %v660_v20, %v659_v19  ;;  %v161_v20 = vld [vmem:[%s5503_s2 + $0x3c8] sm:$0xff] }
  0x7e   :  { %2917 = vmatprep.subr.bf16.mxu0 %v2916_v40  ;;  %3062 = vmatpush1.bf16.msra.mxu1 %v3061_v48  ;;  %v577_v40 = vld [vmem:[%s5501_s3 + $0x660] sm:$0xff]  ;;  %v2976_v42 = vpack.c.bf16 %v594_v38, %v593_v37  ;;  %v635_v37 = vld [vmem:[%s5501_s3 + $0x830] sm:$0xff] }
  0x7f   :  { %3063 = vmatprep.subr.bf16.mxu1 %v3414_v13  ;;  %v2978_v48 = vpack.c.bf16 %v578_v43, %v577_v40  ;;  %v79_v40 = vld [vmem:[%s5503_s2 + $0x138] sm:$0xff]  ;;  %v96_v43 = vld [vmem:[%s5503_s2 + $0x1c0] sm:$0xff] }
  0x80   :  { %v160_v19 = vld [vmem:[%s5503_s2 + $0x3c0] sm:$0xff] }
  0x81   :  { %2919 = vmatpush3.bf16.msra.mxu0 %v2918_v46  ;;  %v595_v46 = vld [vmem:[%s5501_s3 + $0x6f0] sm:$0xff] }
  0x82   :  { %2953 = vmatprep.subr.bf16.mxu0 %v2952_v49  ;;  %3065 = vmatpush1.bf16.msra.mxu1 %v3064_v58  ;;  %v3082_v49 = vpack.c.bf16 %v684_v45, %v683_v44  ;;  %v2980_v50 = vpack.c.bf16 %v596_v47, %v595_v46  ;;  %v2982_v58 = vpack.c.bf16 %v580_v52, %v579_v51  ;;  %v97_v44 = vld [vmem:[%s5503_s2 + $0x1c8] sm:$0xff]  ;;  %v653_v45 = vld [vmem:[%s5501_s3 + $0x8c0] sm:$0xff] }
  0x83   :  { %3066 = vmatprep.subr.bf16.mxu1 %v3414_v13  ;;  %v654_v46 = vld [vmem:[%s5501_s3 + $0x8c8] sm:$0xff]  ;;  %v80_v51 = vld [vmem:[%s5503_s2 + $0x140] sm:$0xff] }
  0x84   :  { %1039 = vmatmul.mubr.f32.vlgmr.msra.gmra.mrb[6].mxu0 %v361_v55  ;;  %v88_v55 = vld [vmem:[%s5503_s2 + $0x180] sm:$0xff]  ;;  %v81_v52 = vld [vmem:[%s5503_s2 + $0x148] sm:$0xff]  ;;  %v3032_v53 = vpack.c.bf16 %v654_v46, %v653_v45  ;;  %v22_v46 = vld [vmem:[%s5504_s0 + $0x10] sm:$0xff] }
  0x85   :  { %2955 = vmatpush3.bf16.msra.mxu0 %v2954_v56  ;;  %1178 = vmatprep.mubr.f32.mxu0 %v366_v1  ;;  %v89_v56 = vld [vmem:[%s5503_s2 + $0x188] sm:$0xff]  ;;  %v369_v45 = vld [vmem:[%s5502_s1 + $0x80] sm:$0xff] }
  0x86   :  { %2957 = vmatprep.subr.bf16.mxu0 %v2956_v59  ;;  %3068 = vmatpush1.bf16.msra.mxu1 %v3067_v4  ;;  %v630_v59 = vld [vmem:[%s5501_s3 + $0x808] sm:$0xff]  ;;  %v3116_v1 = vpack.c.bf16 %v89_v56, %v88_v55  ;;  %v647_v4 = vld [vmem:[%s5501_s3 + $0x890] sm:$0xff]  ;;  %v99_v56 = vld [vmem:[%s5503_s2 + $0x1d8] sm:$0xff] }
  0x87   :  { %3069 = vmatprep.subr.bf16.mxu1 %v3414_v13  ;;  %v3018_v9 = vpack.c.bf16 %v630_v59, %v629_v57  ;;  %v98_v55 = vld [vmem:[%s5503_s2 + $0x1d0] sm:$0xff]  ;;  %v3134_v59 = vpack.c.bf16 %v81_v52, %v80_v51  ;;  %v139_v52 = vld [vmem:[%s5503_s2 + $0x318] sm:$0xff] }
  0x88   :  { %v655_v57 = vld [vmem:[%s5501_s3 + $0x8d0] sm:$0xff] }
  0x89   :  { %2959 = vmatpush3.bf16.msra.mxu0 %v2958_v2  ;;  %v90_v2 = vld [vmem:[%s5503_s2 + $0x190] sm:$0xff] }
  0x8a   :  { %2961 = vmatprep.subr.bf16.mxu0 %v2960_v5  ;;  %3071 = vmatpush1.bf16.msra.mxu1 %v3070_v14  ;;  %v648_v5 = vld [vmem:[%s5501_s3 + $0x898] sm:$0xff]  ;;  %v138_v51 = vld [vmem:[%s5503_s2 + $0x310] sm:$0xff] }
  0x8b   :  { %3072 = vmatprep.subr.bf16.mxu1 %v3414_v13  ;;  %v75_v14 = vld [vmem:[%s5503_s2 + $0x118] sm:$0xff] }
  0x8c   :  { %v3122_v22 = vpack.c.bf16 %v75_v14, %v74_v12  ;;  %v84_v12 = vld [vmem:[%s5503_s2 + $0x160] sm:$0xff]  ;;  %v85_v14 = vld [vmem:[%s5503_s2 + $0x168] sm:$0xff] }
  0x8d   :  { %2963 = vmatpush3.bf16.msra.mxu0 %v2962_v11  ;;  %v3120_v11 = vpack.c.bf16 %v91_v3, %v90_v2  ;;  %v640_v3 = vld [vmem:[%s5501_s3 + $0x858] sm:$0xff] }
  0x8e   :  { %2965 = vmatprep.subr.bf16.mxu0 %v2964_v15  ;;  %3074 = vmatpush1.bf16.msra.mxu1 %v3073_v23  ;;  %v3020_v15 = vpack.c.bf16 %v648_v5, %v647_v4  ;;  %v23_v23 = vld [vmem:[%s5504_s0 + $0x18] sm:$0xff]  ;;  %v100_v4 = vld [vmem:[%s5503_s2 + $0x1e0] sm:$0xff]  ;;  %v101_v5 = vld [vmem:[%s5503_s2 + $0x1e8] sm:$0xff] }
  0x8f   :  { %3075 = vmatprep.subr.bf16.mxu1 %v3414_v13 }
  0x91   :  { %2967 = vmatpush3.bf16.msra.mxu0 %v2966_v21  ;;  %v370_v21 = vld [vmem:[%s5502_s1 + $0x88] sm:$0xff] }
  0x92   :  { %2969 = vmatprep.subr.bf16.mxu0 %v2968_v24  ;;  %3077 = vmatpush1.bf16.msra.mxu1 %v3076_v32  ;;  %v3022_v24 = vpack.c.bf16 %v632_v16, %v631_v10  ;;  %v95_v32 = vld [vmem:[%s5503_s2 + $0x1b8] sm:$0xff]  ;;  %v641_v10 = vld [vmem:[%s5501_s3 + $0x860] sm:$0xff]  ;;  %v642_v16 = vld [vmem:[%s5501_s3 + $0x868] sm:$0xff] }
  0x93   :  { %3078 = vmatprep.subr.bf16.mxu1 %v3414_v13  ;;  %v3128_v38 = vpack.c.bf16 %v95_v32, %v94_v31  ;;  %v56_v31 = vld [vmem:[%s5503_s2 + $0x80] sm:$0xff]  ;;  %v57_v32 = vld [vmem:[%s5503_s2 + $0x88] sm:$0xff] }
  0x95   :  { %2971 = vmatpush3.bf16.msra.mxu0 %v2970_v30  ;;  %v634_v30 = vld [vmem:[%s5501_s3 + $0x828] sm:$0xff] }
  0x96   :  { %2973 = vmatprep.subr.bf16.mxu0 %v2972_v33  ;;  %3080 = vmatpush1.bf16.msra.mxu1 %v3079_v41  ;;  %v651_v33 = vld [vmem:[%s5501_s3 + $0x8b0] sm:$0xff]  ;;  %v3026_v36 = vpack.c.bf16 %v634_v30, %v633_v25  ;;  %v153_v30 = vld [vmem:[%s5503_s2 + $0x388] sm:$0xff] }
  0x97   :  { %3081 = vmatprep.subr.bf16.mxu1 %v3414_v13  ;;  %v3028_v41 = vpack.c.bf16 %v652_v34, %v651_v33  ;;  %v86_v25 = vld [vmem:[%s5503_s2 + $0x170] sm:$0xff] }
  0x99   :  { %2975 = vmatpush3.bf16.msra.mxu0 %v2974_v39  ;;  %v78_v39 = vld [vmem:[%s5503_s2 + $0x130] sm:$0xff] }
  0x9a   :  { %2977 = vmatprep.subr.bf16.mxu0 %v2976_v42  ;;  %3083 = vmatpush1.bf16.msra.mxu1 %v3082_v49  ;;  %v636_v42 = vld [vmem:[%s5501_s3 + $0x838] sm:$0xff]  ;;  %v3130_v47 = vpack.c.bf16 %v79_v40, %v78_v39  ;;  %v637_v49 = vld [vmem:[%s5501_s3 + $0x840] sm:$0xff]  ;;  %v3084_v39 = vpack.c.bf16 %v57_v32, %v56_v31  ;;  %v41_v40 = vld [vmem:[%s5503_s2 + $0x8] sm:$0xff] }
  0x9b   :  { %1372 = vmatprep.subr.mxu1 %v3415_v63  ;;  %v3034_v60 = vpack.c.bf16 %v638_v54, %v637_v49  ;;  %v42_v49 = vld [vmem:[%s5503_s2 + $0x10] sm:$0xff]  ;;  %v43_v54 = vld [vmem:[%s5503_s2 + $0x18] sm:$0xff] }
  0x9c   :  { %v162_v31 = vld [vmem:[%s5503_s2 + $0x3d0] sm:$0xff]  ;;  %v163_v32 = vld [vmem:[%s5503_s2 + $0x3d8] sm:$0xff] }
  0x9d   :  { %2979 = vmatpush3.bf16.msra.mxu0 %v2978_v48  ;;  %v3030_v48 = vpack.c.bf16 %v636_v42, %v635_v37  ;;  %v136_v37 = vld [vmem:[%s5503_s2 + $0x300] sm:$0xff]  ;;  %v155_v42 = vld [vmem:[%s5503_s2 + $0x398] sm:$0xff] }
  0x9e   :  { %2981 = vmatprep.subr.bf16.mxu0 %v2980_v50  ;;  %2125 = vmatpush1.msk.msra.mxu1 %vm690_vm1, %v685_v0  ;;  %v3132_v50 = vpack.c.bf16 %v97_v44, %v96_v43  ;;  %v82_v0 = vld [vmem:[%s5503_s2 + $0x150] sm:$0xff]  ;;  %v59_v44 = vld [vmem:[%s5503_s2 + $0x98] sm:$0xff] }
  0x9f   :  { %3117 = vmatprep.subr.bf16.mxu1 %v3116_v1  ;;  %1389 = vmatmul.mubr.f32.vlgmr.msra.gmra.mrb[6].mxu1 %v371_v7  ;;  %v83_v1 = vld [vmem:[%s5503_s2 + $0x158] sm:$0xff]  ;;  %v658_v7 = vld [vmem:[%s5501_s3 + $0x8e8] sm:$0xff]  ;;  %v58_v43 = vld [vmem:[%s5503_s2 + $0x90] sm:$0xff] }
  0xa0   :  { %3119 = vmatpush3.bf16.msra.mxu1 %v3118_v8  ;;  %1534 = vmatprep.mubr.f32.mxu1 %v23_v23  ;;  %v3138_v8 = vpack.c.bf16 %v83_v1, %v82_v0  ;;  %v643_v23 = vld [vmem:[%s5501_s3 + $0x870] sm:$0xff]  ;;  %v44_v0 = vld [vmem:[%s5503_s2 + $0x20] sm:$0xff] }
  0xa1   :  { %2983 = vmatpush3.bf16.msra.mxu0 %v2982_v58  ;;  %3121 = vmatprep.subr.bf16.mxu1 %v3120_v11  ;;  %v656_v58 = vld [vmem:[%s5501_s3 + $0x8d8] sm:$0xff]  ;;  %v3140_v11 = vpack.c.bf16 %v101_v5, %v100_v4  ;;  %v3046_v34 = vpack.c.bf16 %v644_v28, %v643_v23  ;;  %v45_v5 = vld [vmem:[%s5503_s2 + $0x28] sm:$0xff] }
  0xa2   :  { %3017 = vmatprep.subr.bf16.mxu0 %v3016_v62  ;;  %v3136_v62 = vpack.c.bf16 %v99_v56, %v98_v55  ;;  %v3036_v2 = vpack.c.bf16 %v656_v58, %v655_v57  ;;  %v156_v55 = vld [vmem:[%s5503_s2 + $0x3a0] sm:$0xff]  ;;  %v157_v56 = vld [vmem:[%s5503_s2 + $0x3a8] sm:$0xff] }
  0xa3   :  { %v60_v57 = vld [vmem:[%s5503_s2 + $0xa0] sm:$0xff]  ;;  %v61_v58 = vld [vmem:[%s5503_s2 + $0xa8] sm:$0xff]  ;;  %v3188_v1 = vpack.c.bf16 %v157_v56, %v156_v55  ;;  %v166_v55 = vld [vmem:[%s5503_s2 + $0x3f0] sm:$0xff] }
  0xa4   :  { %1179 = vmatmul.mubr.f32.vlgmr.msra.gmra.mrb[8].mxu0 %v365_v6  ;;  %3123 = vmatpush3.bf16.msra.mxu1 %v3122_v22  ;;  %v657_v6 = vld [vmem:[%s5501_s3 + $0x8e0] sm:$0xff]  ;;  %v3042_v22 = vpack.c.bf16 %v642_v16, %v641_v10  ;;  %v3092_v4 = vpack.c.bf16 %v61_v58, %v60_v57  ;;  %v143_v16 = vld [vmem:[%s5503_s2 + $0x338] sm:$0xff]  ;;  %v145_v28 = vld [vmem:[%s5503_s2 + $0x348] sm:$0xff] }
  0xa5   :  { %3019 = vmatpush3.bf16.msra.mxu0 %v3018_v9  ;;  %1318 = vmatprep.mubr.f32.mxu0 %v370_v21  ;;  %v3038_v9 = vpack.c.bf16 %v640_v3, %v639_v61  ;;  %v3142_v21 = vpack.c.bf16 %v85_v14, %v84_v12  ;;  %v27_v61 = vld [vmem:[%s5504_s0 + $0x38] sm:$0xff]  ;;  %v141_v3 = vld [vmem:[%s5503_s2 + $0x328] sm:$0xff]  ;;  %v46_v12 = vld [vmem:[%s5503_s2 + $0x30] sm:$0xff] }
  0xa6   :  { %3021 = vmatprep.subr.bf16.mxu0 %v3020_v15  ;;  %3125 = vmatprep.subr.bf16.mxu1 %v3124_v26  ;;  %v3040_v15 = vpack.c.bf16 %v658_v7, %v657_v6  ;;  %v87_v26 = vld [vmem:[%s5503_s2 + $0x178] sm:$0xff]  ;;  %v158_v6 = vld [vmem:[%s5503_s2 + $0x3b0] sm:$0xff] }
  0xa7   :  { %v3146_v33 = vpack.c.bf16 %v87_v26, %v86_v25  ;;  %v159_v7 = vld [vmem:[%s5503_s2 + $0x3b8] sm:$0xff]  ;;  %v48_v25 = vld [vmem:[%s5503_s2 + $0x40] sm:$0xff]  ;;  %v3196_v26 = vpack.c.bf16 %v161_v20, %v160_v19  ;;  %v70_v57 = vld [vmem:[%s5503_s2 + $0xf0] sm:$0xff] }
  0xa8   :  { %3127 = vmatpush3.bf16.msra.mxu1 %v3126_v35  ;;  %v40_v35 = vld [vmem:[%s5503_s2] sm:$0xff]  ;;  %v3192_v14 = vpack.c.bf16 %v159_v7, %v158_v6  ;;  %v167_v56 = vld [vmem:[%s5503_s2 + $0x3f8] sm:$0xff]  ;;  %v121_v7 = vld [vmem:[%s5503_s2 + $0x288] sm:$0xff] }
  0xa9   :  { %3023 = vmatpush3.bf16.msra.mxu0 %v3022_v24  ;;  %3129 = vmatprep.subr.bf16.mxu1 %v3128_v38  ;;  %v3144_v24 = vpack.c.bf16 %v103_v18, %v102_v17  ;;  %v137_v38 = vld [vmem:[%s5503_s2 + $0x308] sm:$0xff]  ;;  %v47_v18 = vld [vmem:[%s5503_s2 + $0x38] sm:$0xff]  ;;  %v120_v6 = vld [vmem:[%s5503_s2 + $0x280] sm:$0xff] }
  0xaa   :  { %3025 = vmatprep.subr.bf16.mxu0 %v3024_v29  ;;  %v152_v29 = vld [vmem:[%s5503_s2 + $0x380] sm:$0xff]  ;;  %v71_v58 = vld [vmem:[%s5503_s2 + $0xf8] sm:$0xff]  ;;  %v122_v19 = vld [vmem:[%s5503_s2 + $0x290] sm:$0xff] }
  0xab   :  { %v123_v20 = vld [vmem:[%s5503_s2 + $0x298] sm:$0xff] }
  0xac   :  { %3131 = vmatpush3.bf16.msra.mxu1 %v3130_v47  ;;  %v3182_v47 = vpack.c.bf16 %v137_v38, %v136_v37  ;;  %v50_v37 = vld [vmem:[%s5503_s2 + $0x50] sm:$0xff]  ;;  %v3200_v38 = vpack.c.bf16 %v163_v32, %v162_v31  ;;  %v220_v31 = vld [vmem:[%s5503_s2 + $0x5a0] sm:$0xff]  ;;  %v221_v32 = vld [vmem:[%s5503_s2 + $0x5a8] sm:$0xff] }
  0xad   :  { %3027 = vmatpush3.bf16.msra.mxu0 %v3026_v36  ;;  %3133 = vmatprep.subr.bf16.mxu1 %v3132_v50  ;;  %v3180_v36 = vpack.c.bf16 %v153_v30, %v152_v29  ;;  %v49_v30 = vld [vmem:[%s5503_s2 + $0x48] sm:$0xff] }
  0xae   :  { %3029 = vmatprep.subr.bf16.mxu0 %v3028_v41  ;;  %v154_v41 = vld [vmem:[%s5503_s2 + $0x390] sm:$0xff] }
  0xaf   :  { %v3184_v50 = vpack.c.bf16 %v155_v42, %v154_v41  ;;  %v51_v42 = vld [vmem:[%s5503_s2 + $0x58] sm:$0xff] }
  0xb0   :  { %3135 = vmatpush3.bf16.msra.mxu1 %v3134_v59  ;;  %v21_v59 = vld [vmem:[%s5504_s0 + $0x8] sm:$0xff] }
  0xb1   :  { %3031 = vmatpush3.bf16.msra.mxu0 %v3030_v48  ;;  %3137 = vmatprep.subr.bf16.mxu1 %v3136_v62  ;;  %v3086_v48 = vpack.c.bf16 %v41_v40, %v40_v35  ;;  %v3090_v62 = vpack.c.bf16 %v43_v54, %v42_v49  ;;  %v147_v40 = vld [vmem:[%s5503_s2 + $0x358] sm:$0xff]  ;;  %v52_v49 = vld [vmem:[%s5503_s2 + $0x60] sm:$0xff]  ;;  %v53_v54 = vld [vmem:[%s5503_s2 + $0x68] sm:$0xff] }
  0xb2   :  { %3033 = vmatprep.subr.bf16.mxu0 %v3032_v53  ;;  %v3088_v53 = vpack.c.bf16 %v59_v44, %v58_v43  ;;  %v164_v43 = vld [vmem:[%s5503_s2 + $0x3e0] sm:$0xff]  ;;  %v165_v44 = vld [vmem:[%s5503_s2 + $0x3e8] sm:$0xff] }
  0xb4   :  { %3139 = vmatpush3.bf16.msra.mxu1 %v3138_v8  ;;  %v62_v8 = vld [vmem:[%s5503_s2 + $0xb0] sm:$0xff] }
  0xb5   :  { %3035 = vmatpush3.bf16.msra.mxu0 %v3034_v60  ;;  %3141 = vmatprep.subr.bf16.mxu1 %v3140_v11  ;;  %v3186_v60 = vpack.c.bf16 %v139_v52, %v138_v51  ;;  %v3094_v11 = vpack.c.bf16 %v45_v5, %v44_v0  ;;  %v148_v51 = vld [vmem:[%s5503_s2 + $0x360] sm:$0xff]  ;;  %v149_v52 = vld [vmem:[%s5503_s2 + $0x368] sm:$0xff]  ;;  %v150_v0 = vld [vmem:[%s5503_s2 + $0x370] sm:$0xff] }
  0xb6   :  { %3037 = vmatprep.subr.bf16.mxu0 %v3036_v2  ;;  %v140_v2 = vld [vmem:[%s5503_s2 + $0x320] sm:$0xff]  ;;  %v217_v5 = vld [vmem:[%s5503_s2 + $0x588] sm:$0xff] }
  0xb7   :  { %v3190_v10 = vpack.c.bf16 %v141_v3, %v140_v2  ;;  %v3112_v2 = vpack.c.bf16 %v71_v58, %v70_v57  ;;  %v55_v3 = vld [vmem:[%s5503_s2 + $0x78] sm:$0xff]  ;;  %v224_v57 = vld [vmem:[%s5503_s2 + $0x5c0] sm:$0xff]  ;;  %v225_v58 = vld [vmem:[%s5503_s2 + $0x5c8] sm:$0xff] }
  0xb8   :  { %3143 = vmatpush3.bf16.msra.mxu1 %v3142_v21  ;;  %v64_v21 = vld [vmem:[%s5503_s2 + $0xc0] sm:$0xff] }
  0xb9   :  { %3039 = vmatpush3.bf16.msra.mxu0 %v3038_v9  ;;  %3145 = vmatprep.subr.bf16.mxu1 %v3144_v24  ;;  %v63_v9 = vld [vmem:[%s5503_s2 + $0xb8] sm:$0xff]  ;;  %v3098_v24 = vpack.c.bf16 %v47_v18, %v46_v12  ;;  %v200_v12 = vld [vmem:[%s5503_s2 + $0x500] sm:$0xff] }
  0xba   :  { %3041 = vmatprep.subr.bf16.mxu0 %v3040_v15  ;;  %v142_v15 = vld [vmem:[%s5503_s2 + $0x330] sm:$0xff]  ;;  %v3096_v17 = vpack.c.bf16 %v63_v9, %v62_v8  ;;  %v219_v18 = vld [vmem:[%s5503_s2 + $0x598] sm:$0xff] }
  0xbb   :  { %v3194_v23 = vpack.c.bf16 %v143_v16, %v142_v15  ;;  %v3148_v15 = vpack.c.bf16 %v121_v7, %v120_v6  ;;  %v105_v16 = vld [vmem:[%s5503_s2 + $0x208] sm:$0xff]  ;;  %v226_v6 = vld [vmem:[%s5503_s2 + $0x5d0] sm:$0xff]  ;;  %v227_v7 = vld [vmem:[%s5503_s2 + $0x5d8] sm:$0xff] }
  0xbc   :  { %3147 = vmatpush3.bf16.msra.mxu1 %v3146_v33  ;;  %v66_v33 = vld [vmem:[%s5503_s2 + $0xd0] sm:$0xff] }
  0xbd   :  { %3043 = vmatpush3.bf16.msra.mxu0 %v3042_v22  ;;  %3181 = vmatprep.subr.bf16.mxu1 %v3180_v36  ;;  %v65_v22 = vld [vmem:[%s5503_s2 + $0xc8] sm:$0xff]  ;;  %v3102_v36 = vpack.c.bf16 %v49_v30, %v48_v25  ;;  %v106_v25 = vld [vmem:[%s5503_s2 + $0x210] sm:$0xff]  ;;  %v107_v30 = vld [vmem:[%s5503_s2 + $0x218] sm:$0xff] }
  0xbe   :  { %3045 = vmatprep.subr.bf16.mxu0 %v3044_v27  ;;  %v144_v27 = vld [vmem:[%s5503_s2 + $0x340] sm:$0xff]  ;;  %v3100_v29 = vpack.c.bf16 %v65_v22, %v64_v21  ;;  %v26_v22 = vld [vmem:[%s5504_s0 + $0x30] sm:$0xff] }
  0xbf   :  { %1535 = vmatmul.mubr.f32.vlgmr.msra.gmra.mrb[8].mxu1 %v22_v46  ;;  %v3198_v35 = vpack.c.bf16 %v145_v28, %v144_v27  ;;  %v69_v46 = vld [vmem:[%s5503_s2 + $0xe8] sm:$0xff]  ;;  %v20_v21 = vld [vmem:[%s5504_s0] sm:$0xff]  ;;  %v202_v27 = vld [vmem:[%s5503_s2 + $0x510] sm:$0xff] }
  0xc0   :  { %3183 = vmatpush3.bf16.msra.mxu1 %v3182_v47  ;;  %1674 = vmatprep.mubr.f32.mxu1 %v27_v61  ;;  %v54_v61 = vld [vmem:[%s5503_s2 + $0x70] sm:$0xff]  ;;  %v203_v28 = vld [vmem:[%s5503_s2 + $0x518] sm:$0xff] }
  0xc1   :  { %3047 = vmatpush3.bf16.msra.mxu0 %v3046_v34  ;;  %3185 = vmatprep.subr.bf16.mxu1 %v3184_v50  ;;  %v67_v34 = vld [vmem:[%s5503_s2 + $0xd8] sm:$0xff]  ;;  %v3204_v50 = vpack.c.bf16 %v165_v44, %v164_v43  ;;  %v3114_v9 = vpack.c.bf16 %v55_v3, %v54_v61  ;;  %v109_v44 = vld [vmem:[%s5503_s2 + $0x228] sm:$0xff] }
  0xc2   :  { %3085 = vmatprep.subr.bf16.mxu0 %v3084_v39  ;;  %v146_v39 = vld [vmem:[%s5503_s2 + $0x350] sm:$0xff]  ;;  %v3104_v41 = vpack.c.bf16 %v67_v34, %v66_v33  ;;  %v124_v33 = vld [vmem:[%s5503_s2 + $0x2a0] sm:$0xff]  ;;  %v125_v34 = vld [vmem:[%s5503_s2 + $0x2a8] sm:$0xff] }
  0xc3   :  { %v3202_v47 = vpack.c.bf16 %v147_v40, %v146_v39  ;;  %v108_v39 = vld [vmem:[%s5503_s2 + $0x220] sm:$0xff]  ;;  %v3252_v40 = vpack.c.bf16 %v221_v32, %v220_v31  ;;  %v3156_v43 = vpack.c.bf16 %v125_v34, %v124_v33  ;;  %v209_v3 = vld [vmem:[%s5503_s2 + $0x548] sm:$0xff]  ;;  %v230_v31 = vld [vmem:[%s5503_s2 + $0x5f0] sm:$0xff] }
  0xc4   :  { %1319 = vmatmul.mubr.f32.vlgmr.msra.gmra.mrb[10].mxu0 %v369_v45  ;;  %3187 = vmatpush3.bf16.msra.mxu1 %v3186_v60  ;;  %v68_v45 = vld [vmem:[%s5503_s2 + $0xe0] sm:$0xff]  ;;  %v3110_v60 = vpack.c.bf16 %v53_v54, %v52_v49  ;;  %v207_v54 = vld [vmem:[%s5503_s2 + $0x538] sm:$0xff]  ;;  %v134_v34 = vld [vmem:[%s5503_s2 + $0x2f0] sm:$0xff] }
  0xc5   :  { %3087 = vmatpush3.bf16.msra.mxu0 %v3086_v48  ;;  %1464 = vmatprep.mubr.f32.mxu0 %v21_v59  ;;  %v3106_v48 = vpack.c.bf16 %v51_v42, %v50_v37  ;;  %v3206_v59 = vpack.c.bf16 %v149_v52, %v148_v51  ;;  %v31_v37 = vld [vmem:[%s5504_s0 + $0x58] sm:$0xff]  ;;  %v205_v42 = vld [vmem:[%s5503_s2 + $0x528] sm:$0xff]  ;;  %v110_v51 = vld [vmem:[%s5503_s2 + $0x230] sm:$0xff] }
  0xc6   :  { %3089 = vmatprep.subr.bf16.mxu0 %v3088_v53  ;;  %3189 = vmatprep.subr.bf16.mxu1 %v3188_v1  ;;  %v3108_v53 = vpack.c.bf16 %v69_v46, %v68_v45  ;;  %v151_v1 = vld [vmem:[%s5503_s2 + $0x378] sm:$0xff]  ;;  %v222_v45 = vld [vmem:[%s5503_s2 + $0x5b0] sm:$0xff] }
  0xc7   :  { %v3210_v8 = vpack.c.bf16 %v151_v1, %v150_v0  ;;  %v223_v46 = vld [vmem:[%s5503_s2 + $0x5b8] sm:$0xff]  ;;  %v112_v0 = vld [vmem:[%s5503_s2 + $0x240] sm:$0xff]  ;;  %v3260_v1 = vpack.c.bf16 %v225_v58, %v224_v57  ;;  %v169_v57 = vld [vmem:[%s5503_s2 + $0x408] sm:$0xff] }
  0xc8   :  { %3191 = vmatpush3.bf16.msra.mxu1 %v3190_v10  ;;  %v104_v10 = vld [vmem:[%s5503_s2 + $0x200] sm:$0xff]  ;;  %v3256_v52 = vpack.c.bf16 %v223_v46, %v222_v45  ;;  %v231_v32 = vld [vmem:[%s5503_s2 + $0x5f8] sm:$0xff]  ;;  %v282_v58 = vld [vmem:[%s5503_s2 + $0x790] sm:$0xff] }
  0xc9   :  { %3091 = vmatpush3.bf16.msra.mxu0 %v3090_v62  ;;  %3193 = vmatprep.subr.bf16.mxu1 %v3192_v14  ;;  %v3208_v62 = vpack.c.bf16 %v167_v56, %v166_v55  ;;  %v201_v14 = vld [vmem:[%s5503_s2 + $0x508] sm:$0xff]  ;;  %v111_v56 = vld [vmem:[%s5503_s2 + $0x238] sm:$0xff]  ;;  %v280_v46 = vld [vmem:[%s5503_s2 + $0x780] sm:$0xff] }
  0xca   :  { %3093 = vmatprep.subr.bf16.mxu0 %v3092_v4  ;;  %v216_v4 = vld [vmem:[%s5503_s2 + $0x580] sm:$0xff]  ;;  %v119_v45 = vld [vmem:[%s5503_s2 + $0x278] sm:$0xff] }
  0xcc   :  { %3195 = vmatpush3.bf16.msra.mxu1 %v3194_v23  ;;  %v3246_v23 = vpack.c.bf16 %v201_v14, %v200_v12  ;;  %v114_v12 = vld [vmem:[%s5503_s2 + $0x250] sm:$0xff]  ;;  %v3264_v14 = vpack.c.bf16 %v227_v7, %v226_v6  ;;  %v267_v6 = vld [vmem:[%s5503_s2 + $0x718] sm:$0xff] }
  0xcd   :  { %3095 = vmatpush3.bf16.msra.mxu0 %v3094_v11  ;;  %3197 = vmatprep.subr.bf16.mxu1 %v3196_v26  ;;  %v3244_v11 = vpack.c.bf16 %v217_v5, %v216_v4  ;;  %v113_v5 = vld [vmem:[%s5503_s2 + $0x248] sm:$0xff] }
  0xce   :  { %3097 = vmatprep.subr.bf16.mxu0 %v3096_v17  ;;  %v218_v17 = vld [vmem:[%s5503_s2 + $0x590] sm:$0xff] }
  0xcf   :  { %v3248_v26 = vpack.c.bf16 %v219_v18, %v218_v17  ;;  %v115_v18 = vld [vmem:[%s5503_s2 + $0x258] sm:$0xff] }
  0xd0   :  { %3199 = vmatpush3.bf16.msra.mxu1 %v3198_v35  ;;  %v25_v35 = vld [vmem:[%s5504_s0 + $0x28] sm:$0xff] }
  0xd1   :  { %3099 = vmatpush3.bf16.msra.mxu0 %v3098_v24  ;;  %3201 = vmatprep.subr.bf16.mxu1 %v3200_v38  ;;  %v3150_v24 = vpack.c.bf16 %v105_v16, %v104_v10  ;;  %v3154_v38 = vpack.c.bf16 %v107_v30, %v106_v25  ;;  %v211_v16 = vld [vmem:[%s5503_s2 + $0x558] sm:$0xff]  ;;  %v116_v25 = vld [vmem:[%s5503_s2 + $0x260] sm:$0xff]  ;;  %v117_v30 = vld [vmem:[%s5503_s2 + $0x268] sm:$0xff] }
  0xd2   :  { %3101 = vmatprep.subr.bf16.mxu0 %v3100_v29  ;;  %v3152_v29 = vpack.c.bf16 %v123_v20, %v122_v19  ;;  %v228_v19 = vld [vmem:[%s5503_s2 + $0x5e0] sm:$0xff]  ;;  %v229_v20 = vld [vmem:[%s5503_s2 + $0x5e8] sm:$0xff] }
  0xd4   :  { %3203 = vmatpush3.bf16.msra.mxu1 %v3202_v47  ;;  %v126_v47 = vld [vmem:[%s5503_s2 + $0x2b0] sm:$0xff] }
  0xd5   :  { %3103 = vmatpush3.bf16.msra.mxu0 %v3102_v36  ;;  %3205 = vmatprep.subr.bf16.mxu1 %v3204_v50  ;;  %v3250_v36 = vpack.c.bf16 %v203_v28, %v202_v27  ;;  %v3158_v50 = vpack.c.bf16 %v109_v44, %v108_v39  ;;  %v212_v27 = vld [vmem:[%s5503_s2 + $0x560] sm:$0xff]  ;;  %v213_v28 = vld [vmem:[%s5503_s2 + $0x568] sm:$0xff]  ;;  %v3174_v39 = vpack.c.bf16 %v117_v30, %v116_v25  ;;  %v191_v30 = vld [vmem:[%s5503_s2 + $0x4b8] sm:$0xff] }
  0xd6   :  { %3105 = vmatprep.subr.bf16.mxu0 %v3104_v41  ;;  %v204_v41 = vld [vmem:[%s5503_s2 + $0x520] sm:$0xff] }
  0xd7   :  { %v3254_v49 = vpack.c.bf16 %v205_v42, %v204_v41  ;;  %v3272_v41 = vpack.c.bf16 %v231_v32, %v230_v31  ;;  %v214_v42 = vld [vmem:[%s5503_s2 + $0x570] sm:$0xff] }
  0xd8   :  { %3207 = vmatpush3.bf16.msra.mxu1 %v3206_v59  ;;  %v128_v59 = vld [vmem:[%s5503_s2 + $0x2c0] sm:$0xff] }
  0xd9   :  { %3107 = vmatpush3.bf16.msra.mxu0 %v3106_v48  ;;  %3209 = vmatprep.subr.bf16.mxu1 %v3208_v62  ;;  %v127_v48 = vld [vmem:[%s5503_s2 + $0x2b8] sm:$0xff]  ;;  %v3162_v62 = vpack.c.bf16 %v111_v56, %v110_v51 }
  0xda   :  { %3109 = vmatprep.subr.bf16.mxu0 %v3108_v53  ;;  %v206_v53 = vld [vmem:[%s5503_s2 + $0x530] sm:$0xff]  ;;  %v3160_v55 = vpack.c.bf16 %v127_v48, %v126_v47  ;;  %v281_v47 = vld [vmem:[%s5503_s2 + $0x788] sm:$0xff]  ;;  %v184_v48 = vld [vmem:[%s5503_s2 + $0x480] sm:$0xff] }
  0xdb   :  { %v3258_v61 = vpack.c.bf16 %v207_v54, %v206_v53  ;;  %v3308_v53 = vpack.c.bf16 %v281_v47, %v280_v46  ;;  %v264_v54 = vld [vmem:[%s5503_s2 + $0x700] sm:$0xff] }
  0xdc   :  { %3211 = vmatpush3.bf16.msra.mxu1 %v3210_v8  ;;  %v130_v8 = vld [vmem:[%s5503_s2 + $0x2d0] sm:$0xff]  ;;  %v176_v46 = vld [vmem:[%s5503_s2 + $0x440] sm:$0xff] }
  0xdd   :  { %3111 = vmatpush3.bf16.msra.mxu0 %v3110_v60  ;;  %3245 = vmatprep.subr.bf16.mxu1 %v3244_v11  ;;  %v129_v60 = vld [vmem:[%s5503_s2 + $0x2c8] sm:$0xff]  ;;  %v3166_v11 = vpack.c.bf16 %v113_v5, %v112_v0  ;;  %v30_v0 = vld [vmem:[%s5504_s0 + $0x50] sm:$0xff] }
  0xde   :  { %3113 = vmatprep.subr.bf16.mxu0 %v3112_v2  ;;  %v208_v2 = vld [vmem:[%s5503_s2 + $0x540] sm:$0xff]  ;;  %v3164_v4 = vpack.c.bf16 %v129_v60, %v128_v59  ;;  %v283_v59 = vld [vmem:[%s5503_s2 + $0x798] sm:$0xff]  ;;  %v186_v60 = vld [vmem:[%s5503_s2 + $0x490] sm:$0xff] }
  0xdf   :  { %1675 = vmatmul.mubr.f32.vlgmr.msra.gmra.mrb[10].mxu1 %v26_v22  ;;  %v3262_v10 = vpack.c.bf16 %v209_v3, %v208_v2  ;;  %v133_v22 = vld [vmem:[%s5503_s2 + $0x2e8] sm:$0xff]  ;;  %v170_v3 = vld [vmem:[%s5503_s2 + $0x410] sm:$0xff] }
  0xe0   :  { %3247 = vmatpush3.bf16.msra.mxu1 %v3246_v23  ;;  %1814 = vmatprep.mubr.f32.mxu1 %v31_v37  ;;  %v3270_v37 = vpack.c.bf16 %v213_v28, %v212_v27  ;;  %v266_v5 = vld [vmem:[%s5503_s2 + $0x710] sm:$0xff]  ;;  %v287_v28 = vld [vmem:[%s5503_s2 + $0x7b8] sm:$0xff] }
  0xe1   :  { %3115 = vmatpush3.bf16.msra.mxu0 %v3114_v9  ;;  %3249 = vmatprep.subr.bf16.mxu1 %v3248_v26  ;;  %v131_v9 = vld [vmem:[%s5503_s2 + $0x2d8] sm:$0xff]  ;;  %v3268_v26 = vpack.c.bf16 %v229_v20, %v228_v19  ;;  %v172_v20 = vld [vmem:[%s5503_s2 + $0x420] sm:$0xff]  ;;  %v286_v27 = vld [vmem:[%s5503_s2 + $0x7b0] sm:$0xff] }
  0xe2   :  { %3149 = vmatprep.subr.bf16.mxu0 %v3148_v15  ;;  %v210_v15 = vld [vmem:[%s5503_s2 + $0x550] sm:$0xff]  ;;  %v3168_v17 = vpack.c.bf16 %v131_v9, %v130_v8  ;;  %v171_v8 = vld [vmem:[%s5503_s2 + $0x418] sm:$0xff]  ;;  %v284_v9 = vld [vmem:[%s5503_s2 + $0x7a0] sm:$0xff] }
  0xe3   :  { %v3266_v23 = vpack.c.bf16 %v211_v16, %v210_v15  ;;  %v29_v15 = vld [vmem:[%s5504_s0 + $0x48] sm:$0xff]  ;;  %v3218_v19 = vpack.c.bf16 %v171_v8, %v170_v3  ;;  %v196_v3 = vld [vmem:[%s5503_s2 + $0x4e0] sm:$0xff] }
  0xe4   :  { %1465 = vmatmul.mubr.f32.vlgmr.msra.gmra.mrb[12].mxu0 %v20_v21  ;;  %3251 = vmatpush3.bf16.msra.mxu1 %v3250_v36  ;;  %v132_v21 = vld [vmem:[%s5503_s2 + $0x2e0] sm:$0xff] }
  0xe5   :  { %3151 = vmatpush3.bf16.msra.mxu0 %v3150_v24  ;;  %1604 = vmatprep.mubr.f32.mxu0 %v25_v35  ;;  %v3170_v24 = vpack.c.bf16 %v115_v18, %v114_v12  ;;  %v135_v35 = vld [vmem:[%s5503_s2 + $0x2f8] sm:$0xff]  ;;  %v189_v12 = vld [vmem:[%s5503_s2 + $0x4a8] sm:$0xff] }
  0xe6   :  { %3153 = vmatprep.subr.bf16.mxu0 %v3152_v29  ;;  %3253 = vmatprep.subr.bf16.mxu1 %v3252_v40  ;;  %v3172_v29 = vpack.c.bf16 %v133_v22, %v132_v21  ;;  %v118_v40 = vld [vmem:[%s5503_s2 + $0x270] sm:$0xff]  ;;  %v3176_v44 = vpack.c.bf16 %v135_v35, %v134_v34  ;;  %v35_v18 = vld [vmem:[%s5504_s0 + $0x78] sm:$0xff]  ;;  %v3320_v34 = vpack.c.bf16 %v287_v28, %v286_v27 }
  0xe7   :  { %v3178_v51 = vpack.c.bf16 %v119_v45, %v118_v40  ;;  %v270_v35 = vld [vmem:[%s5503_s2 + $0x730] sm:$0xff]  ;;  %v288_v40 = vld [vmem:[%s5503_s2 + $0x7c0] sm:$0xff] }
  0xe8   :  { %3255 = vmatpush3.bf16.msra.mxu1 %v3254_v49  ;;  %v185_v49 = vld [vmem:[%s5503_s2 + $0x488] sm:$0xff]  ;;  %v182_v28 = vld [vmem:[%s5503_s2 + $0x470] sm:$0xff] }
  0xe9   :  { %3155 = vmatpush3.bf16.msra.mxu0 %v3154_v38  ;;  %3257 = vmatprep.subr.bf16.mxu1 %v3256_v52  ;;  %v168_v52 = vld [vmem:[%s5503_s2 + $0x400] sm:$0xff]  ;;  %v3212_v56 = vpack.c.bf16 %v185_v49, %v184_v48  ;;  %v273_v49 = vld [vmem:[%s5503_s2 + $0x748] sm:$0xff] }
  0xea   :  { %3157 = vmatprep.subr.bf16.mxu0 %v3156_v43  ;;  %v215_v43 = vld [vmem:[%s5503_s2 + $0x578] sm:$0xff]  ;;  %v3214_v2 = vpack.c.bf16 %v169_v57, %v168_v52  ;;  %v272_v48 = vld [vmem:[%s5503_s2 + $0x740] sm:$0xff]  ;;  %v290_v52 = vld [vmem:[%s5503_s2 + $0x7d0] sm:$0xff] }
  0xec   :  { %3259 = vmatpush3.bf16.msra.mxu1 %v3258_v61  ;;  %v187_v61 = vld [vmem:[%s5503_s2 + $0x498] sm:$0xff] }
  0xed   :  { %3159 = vmatpush3.bf16.msra.mxu0 %v3158_v50  ;;  %3261 = vmatprep.subr.bf16.mxu1 %v3260_v1  ;;  %v3274_v50 = vpack.c.bf16 %v215_v43, %v214_v42  ;;  %v3216_v7 = vpack.c.bf16 %v187_v61, %v186_v60  ;;  %v192_v42 = vld [vmem:[%s5503_s2 + $0x4c0] sm:$0xff]  ;;  %v193_v43 = vld [vmem:[%s5503_s2 + $0x4c8] sm:$0xff]  ;;  %v274_v60 = vld [vmem:[%s5503_s2 + $0x750] sm:$0xff] }
  0xee   :  { %3161 = vmatprep.subr.bf16.mxu0 %v3160_v55  ;;  %v265_v55 = vld [vmem:[%s5503_s2 + $0x708] sm:$0xff]  ;;  %v275_v61 = vld [vmem:[%s5503_s2 + $0x758] sm:$0xff] }
  0xef   :  { %v3310_v1 = vpack.c.bf16 %v265_v55, %v264_v54  ;;  %v194_v54 = vld [vmem:[%s5503_s2 + $0x4d0] sm:$0xff]  ;;  %v195_v55 = vld [vmem:[%s5503_s2 + $0x4d8] sm:$0xff] }
  0xf0   :  { %3263 = vmatpush3.bf16.msra.mxu1 %v3262_v10  ;;  %v285_v10 = vld [vmem:[%s5503_s2 + $0x7a8] sm:$0xff] }
  0xf1   :  { %3163 = vmatpush3.bf16.msra.mxu0 %v3162_v62  ;;  %3265 = vmatprep.subr.bf16.mxu1 %v3264_v14  ;;  %v24_v62 = vld [vmem:[%s5504_s0 + $0x20] sm:$0xff]  ;;  %v3316_v22 = vpack.c.bf16 %v285_v10, %v284_v9  ;;  %v277_v10 = vld [vmem:[%s5503_s2 + $0x768] sm:$0xff] }
  0xf2   :  { %3165 = vmatprep.subr.bf16.mxu0 %v3164_v4  ;;  %v3312_v4 = vpack.c.bf16 %v283_v59, %v282_v58  ;;  %v178_v58 = vld [vmem:[%s5503_s2 + $0x450] sm:$0xff]  ;;  %v276_v9 = vld [vmem:[%s5503_s2 + $0x760] sm:$0xff] }
  0xf4   :  { %3267 = vmatpush3.bf16.msra.mxu1 %v3266_v23  ;;  %v268_v23 = vld [vmem:[%s5503_s2 + $0x720] sm:$0xff] }
  0xf5   :  { %3167 = vmatpush3.bf16.msra.mxu0 %v3166_v11  ;;  %3269 = vmatprep.subr.bf16.mxu1 %v3268_v26  ;;  %v188_v11 = vld [vmem:[%s5503_s2 + $0x4a0] sm:$0xff]  ;;  %v173_v26 = vld [vmem:[%s5503_s2 + $0x428] sm:$0xff] }
  0xf6   :  { %3169 = vmatprep.subr.bf16.mxu0 %v3168_v17  ;;  %v3314_v17 = vpack.c.bf16 %v267_v6, %v266_v5  ;;  %v3220_v25 = vpack.c.bf16 %v189_v12, %v188_v11  ;;  %v3222_v32 = vpack.c.bf16 %v173_v26, %v172_v20  ;;  %v3330_v5 = vpack.c.bf16 %v275_v61, %v274_v60  ;;  %v181_v12 = vld [vmem:[%s5503_s2 + $0x468] sm:$0xff]  ;;  %v279_v26 = vld [vmem:[%s5503_s2 + $0x778] sm:$0xff]  ;;  %v332_v60 = vld [vmem:[%s5503_s2 + $0x920] sm:$0xff] }
  0xf7   :  { %v2162_v33 = vpop.f32.mrb[0].mxu0  ;;  %v3334_v20 = vpack.c.bf16 %v277_v10, %v276_v9  ;;  %v333_v61 = vld [vmem:[%s5503_s2 + $0x928] sm:$0xff]  ;;  %v238_v9 = vld [vmem:[%s5503_s2 + $0x630] sm:$0xff]  ;;  %v239_v10 = vld [vmem:[%s5503_s2 + $0x638] sm:$0xff] }
  0xf8   :  { %v2163_v36 = vpop.f32.mrb[1].mxu0  ;;  %3271 = vmatpush3.bf16.msra.mxu1 %v3270_v37 }
  0xf9   :  { %v4952_v38 = vadd.f32 %v2163_v36, %v2162_v33  ;;  %3171 = vmatpush3.bf16.msra.mxu0 %v3170_v24  ;;  %3273 = vmatprep.subr.bf16.mxu1 %v3272_v41  ;;  %v269_v24 = vld [vmem:[%s5503_s2 + $0x728] sm:$0xff]  ;;  %v174_v33 = vld [vmem:[%s5503_s2 + $0x430] sm:$0xff]  ;;  %v271_v36 = vld [vmem:[%s5503_s2 + $0x738] sm:$0xff] }
  0xfa   :  { %3173 = vmatprep.subr.bf16.mxu0 %v3172_v29  ;;  %v190_v29 = vld [vmem:[%s5503_s2 + $0x4b0] sm:$0xff]  ;;  %v3318_v31 = vpack.c.bf16 %v269_v24, %v268_v23  ;;  %v289_v41 = vld [vmem:[%s5503_s2 + $0x7c8] sm:$0xff] }
  0xfb   :  { %v3224_v37 = vpack.c.bf16 %v191_v30, %v190_v29  ;;  %v3324_v47 = vpack.c.bf16 %v289_v41, %v288_v40  ;;  %v183_v29 = vld [vmem:[%s5503_s2 + $0x478] sm:$0xff]  ;;  %v250_v40 = vld [vmem:[%s5503_s2 + $0x690] sm:$0xff] }
  0xfc   :  { %3275 = vmatpush3.bf16.msra.mxu1 %v3274_v50  ;;  %v3228_v50 = vpack.c.bf16 %v193_v43, %v192_v42  ;;  %v251_v41 = vld [vmem:[%s5503_s2 + $0x698] sm:$0xff]  ;;  %v34_v42 = vld [vmem:[%s5504_s0 + $0x70] sm:$0xff] }
  0xfd   :  { %3175 = vmatpush3.bf16.msra.mxu0 %v3174_v39  ;;  %3309 = vmatprep.subr.bf16.mxu1 %v3308_v53  ;;  %v175_v39 = vld [vmem:[%s5503_s2 + $0x438] sm:$0xff] }
  0xfe   :  { %3177 = vmatprep.subr.bf16.mxu0 %v3176_v44  ;;  %v3322_v44 = vpack.c.bf16 %v271_v36, %v270_v35  ;;  %v3226_v45 = vpack.c.bf16 %v175_v39, %v174_v33  ;;  %v291_v53 = vld [vmem:[%s5503_s2 + $0x7d8] sm:$0xff]  ;;  %v328_v35 = vld [vmem:[%s5503_s2 + $0x900] sm:$0xff]  ;;  %v233_v39 = vld [vmem:[%s5503_s2 + $0x608] sm:$0xff] }
  0xff   :  { %1815 = vmatmul.mubr.f32.vlgmr.msra.gmra.mrb[12].mxu1 %v30_v0  ;;  %v3328_v59 = vpack.c.bf16 %v291_v53, %v290_v52  ;;  %v179_v0 = vld [vmem:[%s5503_s2 + $0x458] sm:$0xff]  ;;  %v253_v52 = vld [vmem:[%s5503_s2 + $0x6a8] sm:$0xff] }
 0x100   :  { %v2267_v14 = vpop.f32.mrb[0].mxu1  ;;  %3311 = vmatpush3.bf16.msra.mxu1 %v3310_v1  ;;  %1954 = vmatprep.mubr.f32.mxu1 %v35_v18  ;;  %v292_v1 = vld [vmem:[%s5503_s2 + $0x7e0] sm:$0xff]  ;;  %v3234_v6 = vpack.c.bf16 %v179_v0, %v178_v58  ;;  %v199_v18 = vld [vmem:[%s5503_s2 + $0x4f8] sm:$0xff] }
 0x101   :  { %3179 = vmatpush3.bf16.msra.mxu0 %v3178_v51  ;;  %v2268_v16 = vpop.f32.mrb[1].mxu1  ;;  %3313 = vmatprep.subr.bf16.mxu1 %v3312_v4  ;;  %v177_v51 = vld [vmem:[%s5503_s2 + $0x448] sm:$0xff]  ;;  %v236_v0 = vld [vmem:[%s5503_s2 + $0x620] sm:$0xff] }
 0x102   :  { %3213 = vmatprep.subr.bf16.mxu0 %v3212_v56  ;;  %v5041_v21 = vadd.f32 %v2268_v16, %v2267_v14  ;;  %v3326_v56 = vpack.c.bf16 %v273_v49, %v272_v48  ;;  %v3230_v57 = vpack.c.bf16 %v177_v51, %v176_v46  ;;  %v197_v4 = vld [vmem:[%s5503_s2 + $0x4e8] sm:$0xff]  ;;  %v294_v14 = vld [vmem:[%s5503_s2 + $0x7f0] sm:$0xff]  ;;  %v3280_v48 = vpack.c.bf16 %v251_v41, %v250_v40  ;;  %v252_v51 = vld [vmem:[%s5503_s2 + $0x6a0] sm:$0xff] }
 0x103   :  { %v3236_v11 = vpack.c.bf16 %v197_v4, %v196_v3  ;;  %v330_v46 = vld [vmem:[%s5503_s2 + $0x910] sm:$0xff]  ;;  %v255_v3 = vld [vmem:[%s5503_s2 + $0x6b8] sm:$0xff]  ;;  %v3379_v4 = vpack.c.bf16 %v333_v61, %v332_v60  ;;  %v245_v40 = vld [vmem:[%s5503_s2 + $0x668] sm:$0xff] }
 0x104   :  { %1605 = vmatmul.mubr.f32.vlgmr.msra.gmra.mrb[14].mxu0 %v24_v62  ;;  %3315 = vmatpush3.bf16.msra.mxu1 %v3314_v17  ;;  %v3232_v62 = vpack.c.bf16 %v195_v55, %v194_v54  ;;  %v198_v17 = vld [vmem:[%s5503_s2 + $0x4f0] sm:$0xff]  ;;  %v33_v54 = vld [vmem:[%s5504_s0 + $0x68] sm:$0xff] }
 0x105   :  { %3215 = vmatpush3.bf16.msra.mxu0 %v3214_v2  ;;  %1744 = vmatprep.mubr.f32.mxu0 %v29_v15  ;;  %v293_v2 = vld [vmem:[%s5503_s2 + $0x7e8] sm:$0xff]  ;;  %v295_v15 = vld [vmem:[%s5503_s2 + $0x7f8] sm:$0xff]  ;;  %v3240_v27 = vpack.c.bf16 %v199_v18, %v198_v17  ;;  %v234_v49 = vld [vmem:[%s5503_s2 + $0x610] sm:$0xff] }
 0x106   :  { %3217 = vmatprep.subr.bf16.mxu0 %v3216_v7  ;;  %3317 = vmatprep.subr.bf16.mxu1 %v3316_v22  ;;  %v180_v7 = vld [vmem:[%s5503_s2 + $0x460] sm:$0xff]  ;;  %v3332_v8 = vpack.c.bf16 %v293_v2, %v292_v1  ;;  %v3336_v24 = vpack.c.bf16 %v295_v15, %v294_v14  ;;  %v237_v1 = vld [vmem:[%s5503_s2 + $0x628] sm:$0xff]  ;;  %v254_v2 = vld [vmem:[%s5503_s2 + $0x6b0] sm:$0xff]  ;;  %v3290_v15 = vpack.c.bf16 %v239_v10, %v238_v9 }
 0x107   :  { %v3238_v23 = vpack.c.bf16 %v181_v12, %v180_v7  ;;  %v335_v7 = vld [vmem:[%s5503_s2 + $0x938] sm:$0xff]  ;;  %v257_v12 = vld [vmem:[%s5503_s2 + $0x6c8] sm:$0xff]  ;;  %v316_v10 = vld [vmem:[%s5503_s2 + $0x8a0] sm:$0xff] }
 0x108   :  { %3319 = vmatpush3.bf16.msra.mxu1 %v3318_v31  ;;  %v248_v31 = vld [vmem:[%s5503_s2 + $0x680] sm:$0xff]  ;;  %v337_v17 = vld [vmem:[%s5503_s2 + $0x948] sm:$0xff]  ;;  %v299_v9 = vld [vmem:[%s5503_s2 + $0x818] sm:$0xff] }
 0x109   :  { %3219 = vmatpush3.bf16.msra.mxu0 %v3218_v19  ;;  %3321 = vmatprep.subr.bf16.mxu1 %v3320_v34  ;;  %v3242_v34 = vpack.c.bf16 %v183_v29, %v182_v28  ;;  %v242_v29 = vld [vmem:[%s5503_s2 + $0x650] sm:$0xff] }
 0x10a   :  { %3221 = vmatprep.subr.bf16.mxu0 %v3220_v25  ;;  %v278_v25 = vld [vmem:[%s5503_s2 + $0x770] sm:$0xff] }
 0x10b   :  { %v3338_v33 = vpack.c.bf16 %v279_v26, %v278_v25  ;;  %v338_v26 = vld [vmem:[%s5503_s2 + $0x950] sm:$0xff] }
 0x10c   :  { %3323 = vmatpush3.bf16.msra.mxu1 %v3322_v44  ;;  %v28_v44 = vld [vmem:[%s5504_s0 + $0x40] sm:$0xff] }
 0x10d   :  { %3223 = vmatpush3.bf16.msra.mxu0 %v3222_v32  ;;  %3325 = vmatprep.subr.bf16.mxu1 %v3324_v47  ;;  %v249_v32 = vld [vmem:[%s5503_s2 + $0x688] sm:$0xff]  ;;  %v331_v47 = vld [vmem:[%s5503_s2 + $0x918] sm:$0xff] }
 0x10e   :  { %3225 = vmatprep.subr.bf16.mxu0 %v3224_v37  ;;  %v3276_v36 = vpack.c.bf16 %v249_v32, %v248_v31  ;;  %v232_v37 = vld [vmem:[%s5503_s2 + $0x600] sm:$0xff]  ;;  %v243_v31 = vld [vmem:[%s5503_s2 + $0x658] sm:$0xff] }
 0x10f   :  { %v260_v32 = vld [vmem:[%s5503_s2 + $0x6e0] sm:$0xff] }
 0x110   :  { %3327 = vmatpush3.bf16.msra.mxu1 %v3326_v56  ;;  %v3376_v56 = vpack.c.bf16 %v331_v47, %v330_v46 }
 0x111   :  { %3227 = vmatpush3.bf16.msra.mxu0 %v3226_v45  ;;  %3329 = vmatprep.subr.bf16.mxu1 %v3328_v59  ;;  %v3278_v45 = vpack.c.bf16 %v233_v39, %v232_v37  ;;  %v244_v39 = vld [vmem:[%s5503_s2 + $0x660] sm:$0xff] }
 0x112   :  { %3229 = vmatprep.subr.bf16.mxu0 %v3228_v50  ;;  %v235_v50 = vld [vmem:[%s5503_s2 + $0x618] sm:$0xff]  ;;  %v3302_v47 = vpack.c.bf16 %v245_v40, %v244_v39  ;;  %v304_v40 = vld [vmem:[%s5503_s2 + $0x840] sm:$0xff] }
 0x113   :  { %v3282_v58 = vpack.c.bf16 %v235_v50, %v234_v49  ;;  %v343_v49 = vld [vmem:[%s5503_s2 + $0x978] sm:$0xff] }
 0x114   :  { %3331 = vmatpush3.bf16.msra.mxu1 %v3330_v5  ;;  %v3286_v5 = vpack.c.bf16 %v237_v1, %v236_v0  ;;  %v297_v0 = vld [vmem:[%s5503_s2 + $0x808] sm:$0xff]  ;;  %v314_v1 = vld [vmem:[%s5503_s2 + $0x890] sm:$0xff] }
 0x115   :  { %3231 = vmatpush3.bf16.msra.mxu0 %v3230_v57  ;;  %3333 = vmatprep.subr.bf16.mxu1 %v3332_v8  ;;  %v39_v57 = vld [vmem:[%s5504_s0 + $0x98] sm:$0xff]  ;;  %v3288_v8 = vpack.c.bf16 %v255_v3, %v254_v2  ;;  %v32_v3 = vld [vmem:[%s5504_s0 + $0x60] sm:$0xff] }
 0x116   :  { %3233 = vmatprep.subr.bf16.mxu0 %v3232_v62  ;;  %v3284_v62 = vpack.c.bf16 %v253_v52, %v252_v51  ;;  %v246_v51 = vld [vmem:[%s5503_s2 + $0x670] sm:$0xff]  ;;  %v247_v52 = vld [vmem:[%s5503_s2 + $0x678] sm:$0xff] }
 0x117   :  { %v2197_v16 = vpop.f32.mrb[2].mxu0  ;;  %v315_v2 = vld [vmem:[%s5503_s2 + $0x898] sm:$0xff] }
 0x118   :  { %v2198_v19 = vpop.f32.mrb[3].mxu0  ;;  %3335 = vmatpush3.bf16.msra.mxu1 %v3334_v20  ;;  %v241_v20 = vld [vmem:[%s5503_s2 + $0x648] sm:$0xff] }
 0x119   :  { %v2199_v22 = vadd.f32 %v2198_v19, %v2197_v16  ;;  %3235 = vmatpush3.bf16.msra.mxu0 %v3234_v6  ;;  %3337 = vmatprep.subr.bf16.mxu1 %v3336_v24  ;;  %v334_v6 = vld [vmem:[%s5503_s2 + $0x930] sm:$0xff]  ;;  %v336_v16 = vld [vmem:[%s5503_s2 + $0x940] sm:$0xff] }
 0x11a   :  { %3237 = vmatprep.subr.bf16.mxu0 %v3236_v11  ;;  %v256_v11 = vld [vmem:[%s5503_s2 + $0x6c0] sm:$0xff]  ;;  %v3382_v14 = vpack.c.bf16 %v335_v7, %v334_v6  ;;  %v3385_v24 = vpack.c.bf16 %v337_v17, %v336_v16  ;;  %v347_v6 = vld [vmem:[%s5503_s2 + $0x998] sm:$0xff]  ;;  %v3344_v7 = vpack.c.bf16 %v315_v2, %v314_v1 }
 0x11b   :  { %v5173_v30 = vadd.f32 %v2199_v22, %v4952_v38  ;;  %v329_v38 = vld [vmem:[%s5503_s2 + $0x908] sm:$0xff]  ;;  %v3292_v18 = vpack.c.bf16 %v257_v12, %v256_v11  ;;  %v240_v19 = vld [vmem:[%s5503_s2 + $0x640] sm:$0xff]  ;;  %v258_v22 = vld [vmem:[%s5503_s2 + $0x6d0] sm:$0xff] }
 0x11c   :  { %3339 = vmatpush3.bf16.msra.mxu1 %v3338_v33  ;;  %v3373_v43 = vpack.c.bf16 %v329_v38, %v328_v35  ;;  %v3294_v25 = vpack.c.bf16 %v241_v20, %v240_v19  ;;  %v261_v33 = vld [vmem:[%s5503_s2 + $0x6e8] sm:$0xff]  ;;  %v3298_v35 = vpack.c.bf16 %v243_v31, %v242_v29  ;;  %v340_v38 = vld [vmem:[%s5503_s2 + $0x960] sm:$0xff]  ;;  %v350_v29 = vld [vmem:[%s5503_s2 + $0x9b0] sm:$0xff] }
 0x11d   :  { %3239 = vmatpush3.bf16.msra.mxu0 %v3238_v23  ;;  %3372 = vmatprep.subr.bf16.mxu1 %v3414_v13  ;;  %v259_v23 = vld [vmem:[%s5503_s2 + $0x6d8] sm:$0xff]  ;;  %v3300_v37 = vpack.c.bf16 %v261_v33, %v260_v32  ;;  %v317_v11 = vld [vmem:[%s5503_s2 + $0x8a8] sm:$0xff]  ;;  %v348_v19 = vld [vmem:[%s5503_s2 + $0x9a0] sm:$0xff] }
 0x11e   :  { %3241 = vmatprep.subr.bf16.mxu0 %v3240_v27  ;;  %v339_v27 = vld [vmem:[%s5503_s2 + $0x958] sm:$0xff]  ;;  %v3296_v28 = vpack.c.bf16 %v259_v23, %v258_v22  ;;  %v349_v20 = vld [vmem:[%s5503_s2 + $0x9a8] sm:$0xff]  ;;  %v3348_v22 = vpack.c.bf16 %v317_v11, %v316_v10  ;;  %v300_v23 = vld [vmem:[%s5503_s2 + $0x820] sm:$0xff] }
 0x11f   :  { %1955 = vmatmul.mubr.f32.vlgmr.msra.gmra.mrb[14].mxu1 %v34_v42  ;;  %v262_v42 = vld [vmem:[%s5503_s2 + $0x6f0] sm:$0xff]  ;;  %v351_v31 = vld [vmem:[%s5503_s2 + $0x9b8] sm:$0xff] }
 0x120   :  { %v2337_v53 = vpop.f32.mrb[2].mxu1  ;;  %3374 = vmatpush1.bf16.msra.mxu1 %v3373_v43  ;;  %2128 = vmatprep.mubr.msk.f32.mxu1 %vm686_vm0, %v39_v57  ;;  %v263_v43 = vld [vmem:[%s5503_s2 + $0x6f8] sm:$0xff]  ;;  %v3306_v57 = vpack.c.bf16 %v247_v52, %v246_v51  ;;  %v302_v33 = vld [vmem:[%s5503_s2 + $0x830] sm:$0xff]  ;;  %v308_v52 = vld [vmem:[%s5503_s2 + $0x860] sm:$0xff] }
 0x121   :  { %3243 = vmatpush3.bf16.msra.mxu0 %v3242_v34  ;;  %v2338_v55 = vpop.f32.mrb[3].mxu1  ;;  %3375 = vmatprep.subr.bf16.mxu1 %v3414_v13  ;;  %v3388_v34 = vpack.c.bf16 %v339_v27, %v338_v26  ;;  %v3304_v50 = vpack.c.bf16 %v263_v43, %v262_v42  ;;  %v319_v26 = vld [vmem:[%s5503_s2 + $0x8b8] sm:$0xff]  ;;  %v3403_v27 = vpack.c.bf16 %v349_v20, %v348_v19  ;;  %v322_v42 = vld [vmem:[%s5503_s2 + $0x8d0] sm:$0xff] }
 0x122   :  { %3277 = vmatprep.subr.bf16.mxu0 %v3276_v36  ;;  %v5230_v59 = vadd.f32 %v2338_v55, %v2337_v53  ;;  %v341_v36 = vld [vmem:[%s5503_s2 + $0x968] sm:$0xff]  ;;  %v323_v43 = vld [vmem:[%s5503_s2 + $0x8d8] sm:$0xff] }
 0x123   :  { %v313_v55 = vld [vmem:[%s5503_s2 + $0x888] sm:$0xff] }
 0x124   :  { %1745 = vmatmul.mubr.f32.vlgmr.msra.gmra.mrb[16].mxu0 %v28_v44  ;;  %3377 = vmatpush1.bf16.msra.mxu1 %v3376_v56 }
 0x125   :  { %3279 = vmatpush3.bf16.msra.mxu0 %v3278_v45  ;;  %1884 = vmatprep.mubr.f32.mxu0 %v33_v54  ;;  %v3391_v45 = vpack.c.bf16 %v341_v36, %v340_v38  ;;  %v312_v54 = vld [vmem:[%s5503_s2 + $0x880] sm:$0xff]  ;;  %v321_v38 = vld [vmem:[%s5503_s2 + $0x8c8] sm:$0xff]  ;;  %v3406_v36 = vpack.c.bf16 %v351_v31, %v350_v29 }
 0x126   :  { %3281 = vmatprep.subr.bf16.mxu0 %v3280_v48  ;;  %3378 = vmatprep.subr.bf16.mxu1 %v3414_v13  ;;  %v342_v48 = vld [vmem:[%s5503_s2 + $0x970] sm:$0xff]  ;;  %v3340_v61 = vpack.c.bf16 %v313_v55, %v312_v54 }
 0x127   :  { %v3394_v56 = vpack.c.bf16 %v343_v49, %v342_v48  ;;  %v38_v48 = vld [vmem:[%s5504_s0 + $0x90] sm:$0xff]  ;;  %v325_v49 = vld [vmem:[%s5503_s2 + $0x8e8] sm:$0xff] }
 0x128   :  { %3380 = vmatpush1.bf16.msra.mxu1 %v3379_v4  ;;  %v326_v55 = vld [vmem:[%s5503_s2 + $0x8f0] sm:$0xff] }
 0x129   :  { %3283 = vmatpush3.bf16.msra.mxu0 %v3282_v58  ;;  %3381 = vmatprep.subr.bf16.mxu1 %v3414_v13  ;;  %v344_v58 = vld [vmem:[%s5503_s2 + $0x980] sm:$0xff] }
 0x12a   :  { %3285 = vmatprep.subr.bf16.mxu0 %v3284_v62  ;;  %v296_v62 = vld [vmem:[%s5503_s2 + $0x800] sm:$0xff] }
 0x12b   :  { %v3342_v4 = vpack.c.bf16 %v297_v0, %v296_v62  ;;  %v310_v62 = vld [vmem:[%s5503_s2 + $0x870] sm:$0xff]  ;;  %v311_v0 = vld [vmem:[%s5503_s2 + $0x878] sm:$0xff] }
 0x12c   :  { %3383 = vmatpush1.bf16.msra.mxu1 %v3382_v14  ;;  %v37_v14 = vld [vmem:[%s5504_s0 + $0x88] sm:$0xff]  ;;  %v3370_v2 = vpack.c.bf16 %v311_v0, %v310_v62 }
 0x12d   :  { %3287 = vmatpush3.bf16.msra.mxu0 %v3286_v5  ;;  %3384 = vmatprep.subr.bf16.mxu1 %v3414_v13  ;;  %v346_v5 = vld [vmem:[%s5503_s2 + $0x990] sm:$0xff] }
 0x12e   :  { %3289 = vmatprep.subr.bf16.mxu0 %v3288_v8  ;;  %v298_v8 = vld [vmem:[%s5503_s2 + $0x810] sm:$0xff]  ;;  %v3400_v16 = vpack.c.bf16 %v347_v6, %v346_v5 }
 0x12f   :  { %v3346_v17 = vpack.c.bf16 %v299_v9, %v298_v8 }
 0x130   :  { %3386 = vmatpush1.bf16.msra.mxu1 %v3385_v24  ;;  %v301_v24 = vld [vmem:[%s5503_s2 + $0x828] sm:$0xff] }
 0x131   :  { %3291 = vmatpush3.bf16.msra.mxu0 %v3290_v15  ;;  %3387 = vmatprep.subr.bf16.mxu1 %v3414_v13 }
 0x132   :  { %3293 = vmatprep.subr.bf16.mxu0 %v3292_v18 }
 0x134   :  { %3389 = vmatpush1.bf16.msra.mxu1 %v3388_v34  ;;  %v303_v34 = vld [vmem:[%s5503_s2 + $0x838] sm:$0xff] }
 0x135   :  { %3295 = vmatpush3.bf16.msra.mxu0 %v3294_v25  ;;  %3390 = vmatprep.subr.bf16.mxu1 %v3414_v13  ;;  %v318_v25 = vld [vmem:[%s5503_s2 + $0x8b0] sm:$0xff] }
 0x136   :  { %3297 = vmatprep.subr.bf16.mxu0 %v3296_v28  ;;  %v3350_v28 = vpack.c.bf16 %v301_v24, %v300_v23  ;;  %v3352_v32 = vpack.c.bf16 %v319_v26, %v318_v25 }
 0x137   :  { %v2232_v41 = vpop.f32.mrb[4].mxu0 }
 0x138   :  { %v2233_v44 = vpop.f32.mrb[5].mxu0  ;;  %3392 = vmatpush1.bf16.msra.mxu1 %v3391_v45  ;;  %v3360_v45 = vpack.c.bf16 %v323_v43, %v322_v42 }
 0x139   :  { %v2234_v46 = vadd.f32 %v2233_v44, %v2232_v41  ;;  %3299 = vmatpush3.bf16.msra.mxu0 %v3298_v35  ;;  %3393 = vmatprep.subr.bf16.mxu1 %v3414_v13  ;;  %v320_v35 = vld [vmem:[%s5503_s2 + $0x8c0] sm:$0xff]  ;;  %v305_v41 = vld [vmem:[%s5503_s2 + $0x848] sm:$0xff] }
 0x13a   :  { %3301 = vmatprep.subr.bf16.mxu0 %v3300_v37  ;;  %v3354_v37 = vpack.c.bf16 %v303_v34, %v302_v33  ;;  %v3356_v39 = vpack.c.bf16 %v321_v38, %v320_v35  ;;  %v352_v44 = vld [vmem:[%s5503_s2 + $0x9c0] sm:$0xf] }
 0x13b   :  { %v901_v53 = vadd.f32 %v2234_v46, %v5173_v30  ;;  %v345_v30 = vld [vmem:[%s5503_s2 + $0x988] sm:$0xff]  ;;  %v306_v46 = vld [vmem:[%s5503_s2 + $0x850] sm:$0xff] }
 0x13c   :  { %3395 = vmatpush1.bf16.msra.mxu1 %v3394_v56  ;;  %v327_v56 = vld [vmem:[%s5503_s2 + $0x8f8] sm:$0xff] }
 0x13d   :  { %3303 = vmatpush3.bf16.msra.mxu0 %v3302_v47  ;;  %v5356_v60 = vadd.f32 %v5041_v21, %v901_v53  ;;  %v3397_v21 = vpack.c.bf16 %v345_v30, %v344_v58  ;;  %3396 = vmatprep.subr.bf16.mxu1 %v3414_v13  ;;  %v307_v47 = vld [vmem:[%s5503_s2 + $0x858] sm:$0xff]  ;;  %v309_v53 = vld [vmem:[%s5503_s2 + $0x868] sm:$0xff] }
 0x13e   :  { %3305 = vmatprep.subr.bf16.mxu0 %v3304_v50  ;;  %v3362_v50 = vpack.c.bf16 %v307_v47, %v306_v46  ;;  %v3366_v30 = vpack.c.bf16 %v309_v53, %v308_v52  ;;  %v2129_v53 = vld [vmem:[%s5505_s4] ss:$0 sm:$0xff] }
 0x140   :  { %v2407_v12 = vpop.f32.mrb[4].mxu1  ;;  %3398 = vmatpush1.bf16.msra.mxu1 %v3397_v21 }
 0x141   :  { %3307 = vmatpush3.bf16.msra.mxu0 %v3306_v57  ;;  %v2408_v15 = vpop.f32.mrb[5].mxu1  ;;  %3399 = vmatprep.subr.bf16.mxu1 %v3414_v13 }
 0x142   :  { %3341 = vmatprep.subr.bf16.mxu0 %v3340_v61  ;;  %v5395_v18 = vadd.f32 %v2408_v15, %v2407_v12  ;;  %v3368_v61 = vpack.c.bf16 %v327_v56, %v326_v55 }
 0x144   :  { %1885 = vmatmul.mubr.f32.vlgmr.msra.gmra.mrb[18].mxu0 %v32_v3  ;;  %3401 = vmatpush1.bf16.msra.mxu1 %v3400_v16  ;;  %v36_v3 = vld [vmem:[%s5504_s0 + $0x80] sm:$0xff] }
 0x145   :  { %3343 = vmatpush3.bf16.msra.mxu0 %v3342_v4  ;;  %2024 = vmatprep.mubr.f32.mxu0 %v37_v14 }
 0x146   :  { %3345 = vmatprep.subr.bf16.mxu0 %v3344_v7  ;;  %3402 = vmatprep.subr.bf16.mxu1 %v3414_v13 }
 0x148   :  { %3404 = vmatpush1.bf16.msra.mxu1 %v3403_v27 }
 0x149   :  { %3347 = vmatpush3.bf16.msra.mxu0 %v3346_v17  ;;  %3405 = vmatprep.subr.bf16.mxu1 %v3414_v13  ;;  %v3358_v13 = vpack.c.bf16 %v305_v41, %v304_v40 }
 0x14a   :  { %3349 = vmatprep.subr.bf16.mxu0 %v3348_v22 }
 0x14c   :  { %3407 = vmatpush1.bf16.msra.mxu1 %v3406_v36 }
 0x14d   :  { %3351 = vmatpush3.bf16.msra.mxu0 %v3350_v28  ;;  %2078 = vmatprep.subr.mxu1 %v3415_v63  ;;  %v324_v63 = vld [vmem:[%s5503_s2 + $0x8e0] sm:$0xff] }
 0x14e   :  { %3353 = vmatprep.subr.bf16.mxu0 %v3352_v32  ;;  %v3364_v51 = vpack.c.bf16 %v325_v49, %v324_v63 }
 0x150   :  { %2127 = vmatpush1.msk.msra.mxu1 %vm690_vm1, %v352_v44 }
 0x151   :  { %3355 = vmatpush3.bf16.msra.mxu0 %v3354_v37  ;;  %2095 = vmatmul.mubr.f32.vlgmr.msra.gmra.mrb[16].mxu1 %v38_v48 }
 0x152   :  { %3357 = vmatprep.subr.bf16.mxu0 %v3356_v39 }
 0x155   :  { %3359 = vmatpush3.bf16.msra.mxu0 %v3358_v13 }
 0x156   :  { %3361 = vmatprep.subr.bf16.mxu0 %v3360_v45 }
 0x157   :  { %v2302_v54 = vpop.f32.mrb[6].mxu0 }
 0x158   :  { %v2303_v57 = vpop.f32.mrb[7].mxu0 }
 0x159   :  { %v2304_v58 = vadd.f32 %v2303_v57, %v2302_v54  ;;  %3363 = vmatpush3.bf16.msra.mxu0 %v3362_v50 }
 0x15a   :  { %3365 = vmatprep.subr.bf16.mxu0 %v3364_v51 }
 0x15b   :  { %v1041_v1 = vadd.f32 %v2304_v58, %v5356_v60 }
 0x15d   :  { %3367 = vmatpush3.bf16.msra.mxu0 %v3366_v30  ;;  %v1111_v21 = vadd.f32 %v5230_v59, %v1041_v1 }
 0x15e   :  { %3369 = vmatprep.subr.bf16.mxu0 %v3368_v61 }
 0x161   :  { %3371 = vmatpush3.bf16.msra.mxu0 %v3370_v2 }
 0x164   :  { %2025 = vmatmul.mubr.f32.vlgmr.msra.gmra.mrb[20].mxu0 %v36_v3 }
 0x172   :  { %v1390_v4 = vpop.f32.mrb[6].mxu1 }
 0x173   :  { %v1392_v6 = vpop.f32.mrb[7].mxu1 }
 0x177   :  { %v2372_v5 = vpop.f32.mrb[8].mxu0 }
 0x178   :  { %v2373_v7 = vpop.f32.mrb[9].mxu0 }
 0x179   :  { %v2374_v8 = vadd.f32 %v2373_v7, %v2372_v5 }
 0x17b   :  { %v1181_v9 = vadd.f32 %v2374_v8, %v1111_v21 }
 0x17d   :  { %v1251_v10 = vadd.f32 %v5395_v18, %v1181_v9 }
 0x192   :  { %v2512_v60 = vpop.f32.mrb[8].mxu1 }
 0x193   :  { %v2513_v12 = vpop.f32.mrb[9].mxu1 }
 0x194   :  { %v2514_v59 = vadd.f32 %v2513_v12, %v2512_v60 }
 0x197   :  { %v2442_v11 = vpop.f32.mrb[10].mxu0 }
 0x198   :  { %v2443_v14 = vpop.f32.mrb[11].mxu0 }
 0x199   :  { %v2444_v15 = vadd.f32 %v2443_v14, %v2442_v11 }
 0x19b   :  { %v1321_v16 = vadd.f32 %v2444_v15, %v1251_v10 }
 0x19d   :  { %v1391_v17 = vadd.f32 %v1390_v4, %v1321_v16 }
 0x1b2   :  { %v2582_v19 = vpop.f32.mrb[10].mxu1 }
 0x1b3   :  { %v2583_v22 = vpop.f32.mrb[11].mxu1 }
 0x1b4   :  { %v2584_v24 = vadd.f32 %v2583_v22, %v2582_v19 }
 0x1b7   :  { %v2477_v20 = vpop.f32.mrb[12].mxu0 }
 0x1b8   :  { %v2478_v23 = vpop.f32.mrb[13].mxu0 }
 0x1b9   :  { %v2479_v25 = vadd.f32 %v2478_v23, %v2477_v20 }
 0x1bb   :  { %v1467_v26 = vadd.f32 %v2479_v25, %v1391_v17 }
 0x1bd   :  { %v1537_v27 = vadd.f32 %v2514_v59, %v1467_v26 }
 0x1d2   :  { %v2652_v28 = vpop.f32.mrb[12].mxu1 }
 0x1d3   :  { %v2653_v31 = vpop.f32.mrb[13].mxu1 }
 0x1d4   :  { %v2654_v32 = vadd.f32 %v2653_v31, %v2652_v28 }
 0x1d7   :  { %v2547_v29 = vpop.f32.mrb[14].mxu0 }
 0x1d8   :  { %v2548_v18 = vpop.f32.mrb[15].mxu0 }
 0x1d9   :  { %v2549_v33 = vadd.f32 %v2548_v18, %v2547_v29 }
 0x1db   :  { %v1607_v34 = vadd.f32 %v2549_v33, %v1537_v27 }
 0x1dd   :  { %v1677_v35 = vadd.f32 %v2584_v24, %v1607_v34 }
 0x1f2   :  { %v2722_v38 = vpop.f32.mrb[14].mxu1 }
 0x1f3   :  { %v2723_v37 = vpop.f32.mrb[15].mxu1 }
 0x1f4   :  { %v2724_v40 = vadd.f32 %v2723_v37, %v2722_v38 }
 0x1f7   :  { %v2617_v36 = vpop.f32.mrb[16].mxu0 }
 0x1f8   :  { %v2618_v39 = vpop.f32.mrb[17].mxu0 }
 0x1f9   :  { %v2619_v41 = vadd.f32 %v2618_v39, %v2617_v36 }
 0x1fb   :  { %v1747_v42 = vadd.f32 %v2619_v41, %v1677_v35 }
 0x1fd   :  { %v1817_v43 = vadd.f32 %v2654_v32, %v1747_v42 }
 0x217   :  { %v2687_v13 = vpop.f32.mrb[18].mxu0 }
 0x218   :  { %v2688_v44 = vpop.f32.mrb[19].mxu0 }
 0x219   :  { %v2689_v45 = vadd.f32 %v2688_v44, %v2687_v13 }
 0x21b   :  { %v1887_v46 = vadd.f32 %v2689_v45, %v1817_v43 }
 0x21d   :  { %v1957_v47 = vadd.f32 %v2724_v40, %v1887_v46 }
 0x224   :  { %v2096_v48 = vpop.f32.mrb[16].mxu1 }
 0x225   :  { %v2098_v63 = vpop.f32.mrb[17].mxu1 }
 0x237   :  { %v2757_v49 = vpop.f32.mrb[20].mxu0 }
 0x238   :  { %v2758_v50 = vpop.f32.mrb[21].mxu0 }
 0x239   :  { %v2759_v51 = vadd.f32 %v2758_v50, %v2757_v49 }
 0x23b   :  { %v2027_v52 = vadd.f32 %v2759_v51, %v1957_v47 }
 0x23d   :  { %v2097_v54 = vadd.f32 %v2096_v48, %v2027_v52 }
 0x23f   :  { %v2107_v55 = vadd.f32 %v2129_v53, %v2097_v54 }
 0x241   :  { %v2109_v56 = vsel %vm2108_vm2, %v2107_v55, -inf }
 0x242   :  { %2110 = vmax.xlane.f32.xlu0 %v2109_v56 }
 0x2cf   :  { %v2111_v57 = vpop.xlane.xlu0 %2110 }
 0x2d0   :  { %v2112_v58 = vsub.f32 %v2107_v55, %v2111_v57 }
 0x2d2   :  { %v2113_v30 = vmul.f32 1.442695, %v2112_v58 }
 0x2d4   :  { %3410 = vpow2.f32 %v2113_v30 }
 0x2de   :  { %v3411_v61 = vpop.eup %3410 }
 0x2df   :  { %v2115_v62 = vsel %vm2108_vm2, %v3411_v61, 0.0 }
 0x2e0   :  { %2116 = vadd.xlane.f32.xlu0 %v2115_v62 }
 0x36d   :  { %v2117_v0 = vpop.xlane.xlu0 %2116 }
 0x36e   :  { %3412 = vrcp.f32 %v2117_v0 }
 0x378   :  { %v3413_v1 = vpop.eup %3412 }
 0x379   :  { %v2119_v2 = vmul.f32 %v3413_v1, %v3411_v61 }
 0x37b   :  { %2120 = vst.msk [vmem:[%s5506_s5] sm:$0xff] %vm2108_vm2, %v2119_v2 }

</bundles_post_ra>
